<compile_context>
chip_gen: v6e
topology: v6e:2x2x1
jax: 0.10.0
libtpu: 0.0.40
codegen_flags: <defaults>
</compile_context>

<pallas_src>
import functools

import jax
import jax.numpy as jnp
import numpy as np
from jax.experimental import pallas as pl
from jax.experimental.pallas import tpu as pltpu  # noqa: F401  (TPU backend module)


# ----------------------------------------------------------------------------
# Fused kernel: all GRU layers + output Linear in one pallas_call (no grid).
# ----------------------------------------------------------------------------
def make_fused_gru_kernel(n_layers, seq_len, batch, input_dim, hidden_dim, n_classes):
    L, B, D, H, C = seq_len, batch, input_dim, hidden_dim, n_classes

    def kernel(*refs):
        # refs = (x, [wih, whh, bih, bhh] * n_layers, w_out, b_out, o)
        x_ref = refs[0]
        layer_refs = refs[1:1 + 4 * n_layers]
        wout_ref = refs[1 + 4 * n_layers]
        bout_ref = refs[2 + 4 * n_layers]
        o_ref = refs[3 + 4 * n_layers]

        # Time-major input, rows ordered (t, b): (L, B, D) -> (L*B, D)
        cur = x_ref[...].reshape(L * B, D)

        h = jnp.zeros((B, H), jnp.float32)
        for layer in range(n_layers):
            wih = layer_refs[4 * layer][...]        # (D_in, 3H)   gate cols r|z|n
            whh = layer_refs[4 * layer + 1][...]    # (H,    3H)
            bih = layer_refs[4 * layer + 2][...]    # (1,    3H)
            bhh = layer_refs[4 * layer + 3][...]    # (1,    3H)

            # Hoisted input projection for all timesteps: one large MXU matmul.
            proj = jnp.dot(cur, wih, preferred_element_type=jnp.float32) + bih  # (L*B, 3H)

            h = jnp.zeros((B, H), jnp.float32)
            outs = []
            for t in range(L):                       # static unrolled recurrence
                g_in = proj[t * B:(t + 1) * B, :]    # (B, 3H)
                g_h = jnp.dot(h, whh, preferred_element_type=jnp.float32) + bhh  # (B, 3H)
                r = jax.nn.sigmoid(g_in[:, 0:H] + g_h[:, 0:H])
                z = jax.nn.sigmoid(g_in[:, H:2 * H] + g_h[:, H:2 * H])
                n = jnp.tanh(g_in[:, 2 * H:3 * H] + r * g_h[:, 2 * H:3 * H])
                h = (1.0 - z) * n + z * h
                if layer < n_layers - 1:
                    outs.append(h)
            if layer < n_layers - 1:
                # Feed full sequence (still in (t, b) row order) to the next layer.
                cur = jnp.concatenate(outs, axis=0)  # (L*B, H)

        # Output Linear on the last timestep of the top layer.
        logits = jnp.dot(h, wout_ref[...], preferred_element_type=jnp.float32) + bout_ref[...]
        o_ref[...] = logits.astype(o_ref.dtype)

    return kernel


@functools.partial(jax.jit, static_argnames=("n_layers", "hidden_dim", "n_classes"))
def basic_gru_forward(x, kparams, *, n_layers, hidden_dim, n_classes):
    """x: (B, L, D) batch-first. kparams: kernel-layout params (see prep_kernel_params)."""
    B, L, D = x.shape
    H, C = hidden_dim, n_classes
    x_tm = jnp.transpose(x, (1, 0, 2)).astype(jnp.float32)   # time-major (L, B, D)

    inputs = [x_tm]
    in_specs = [pl.BlockSpec((L, B, D), lambda: (0, 0, 0))]
    for layer in range(n_layers):
        wih, whh, bih, bhh = kparams["gru"][layer]
        d_in = wih.shape[0]
        inputs += [wih, whh, bih, bhh]
        in_specs += [
            pl.BlockSpec((d_in, 3 * H), lambda: (0, 0)),
            pl.BlockSpec((H, 3 * H), lambda: (0, 0)),
            pl.BlockSpec((1, 3 * H), lambda: (0, 0)),
            pl.BlockSpec((1, 3 * H), lambda: (0, 0)),
        ]
    inputs += [kparams["out_w_t"], kparams["out_b"]]
    in_specs += [
        pl.BlockSpec((H, C), lambda: (0, 0)),
        pl.BlockSpec((1, C), lambda: (0, 0)),
    ]

    kernel = make_fused_gru_kernel(n_layers, L, B, D, H, C)
    return pl.pallas_call(
        kernel,
        out_shape=jax.ShapeDtypeStruct((B, C), jnp.float32),
        in_specs=in_specs,
        out_specs=pl.BlockSpec((B, C), lambda: (0, 0)),
    )(*inputs)


# ----------------------------------------------------------------------------
# Parameters: PyTorch-layout init + one-time host-side relayout for the kernel.
# ----------------------------------------------------------------------------
def init_params(key, n_layers, input_dim, hidden_dim, n_classes):
    """Deterministic params in PyTorch nn.GRU / nn.Linear layout (gate order r,z,n)."""
    params = {"gru": []}
    k = 1.0 / np.sqrt(hidden_dim)
    for layer in range(n_layers):
        d_in = input_dim if layer == 0 else hidden_dim
        key, k1, k2, k3, k4 = jax.random.split(key, 5)
        w_ih = jax.random.uniform(k1, (3 * hidden_dim, d_in), jnp.float32, -k, k)
        w_hh = jax.random.uniform(k2, (3 * hidden_dim, hidden_dim), jnp.float32, -k, k)
        b_ih = jax.random.uniform(k3, (3 * hidden_dim,), jnp.float32, -k, k)
        b_hh = jax.random.uniform(k4, (3 * hidden_dim,), jnp.float32, -k, k)
        params["gru"].append((w_ih, w_hh, b_ih, b_hh))
    key, k1, k2 = jax.random.split(key, 3)
    params["out_w"] = jax.random.uniform(k1, (n_classes, hidden_dim), jnp.float32, -k, k)
    params["out_b"] = jax.random.uniform(k2, (n_classes,), jnp.float32, -k, k)
    return params


def prep_kernel_params(params, n_layers):
    """One-time relayout: transpose + fuse gates so the jitted forward does no reshapes."""
    kp = {"gru": []}
    for layer in range(n_layers):
        w_ih, w_hh, b_ih, b_hh = params["gru"][layer]
        kp["gru"].append((
            jnp.asarray(w_ih).T,            # (D_in, 3H), columns ordered r|z|n
            jnp.asarray(w_hh).T,            # (H,    3H)
            jnp.asarray(b_ih)[None, :],     # (1,    3H)
            jnp.asarray(b_hh)[None, :],     # (1,    3H)
        ))
    kp["out_w_t"] = jnp.asarray(params["out_w"]).T        # (H, C)
    kp["out_b"] = jnp.asarray(params["out_b"])[None, :]   # (1, C)
    return kp


# ----------------------------------------------------------------------------
# Pure-JAX reference (PyTorch nn.GRU semantics) for the correctness check.
# ----------------------------------------------------------------------------
def basic_gru_reference(x, params, n_layers, hidden_dim):
    B, L, _ = x.shape
    h_seq = x
    for layer in range(n_layers):
        w_ih, w_hh, b_ih, b_hh = params["gru"][layer]
        h = jnp.zeros((B, hidden_dim), jnp.float32)
        outs = []
        for t in range(L):
            x_t = h_seq[:, t, :]
            gi = x_t @ w_ih.T + b_ih
            gh = h @ w_hh.T + b_hh
            i_r, i_z, i_n = jnp.split(gi, 3, axis=-1)
            h_r, h_z, h_n = jnp.split(gh, 3, axis=-1)
            r = jax.nn.sigmoid(i_r + h_r)
            z = jax.nn.sigmoid(i_z + h_z)
            n = jnp.tanh(i_n + r * h_n)
            h = (1.0 - z) * n + z * h
            outs.append(h)
        h_seq = jnp.stack(outs, axis=1)
    h_t = h_seq[:, -1, :]
    return h_t @ params["out_w"].T + params["out_b"]


if __name__ == "__main__":
    n_layers = 2
    hidden_dim = 32
    input_dim = 32
    n_classes = 8
    batch = 8
    seq_len = 8

    key = jax.random.PRNGKey(0)
    key, pkey, xkey = jax.random.split(key, 3)
    params = init_params(pkey, n_layers, input_dim, hidden_dim, n_classes)
    kparams = prep_kernel_params(params, n_layers)
    x = jax.random.normal(xkey, (batch, seq_len, input_dim), jnp.float32)

    logits = basic_gru_forward(x, kparams, n_layers=n_layers,
                               hidden_dim=hidden_dim, n_classes=n_classes)
    logits = jax.block_until_ready(logits)

    ref = basic_gru_reference(x, params, n_layers, hidden_dim)
    np.testing.assert_allclose(np.asarray(logits), np.asarray(ref),
                               rtol=1e-5, atol=1e-5)

    assert logits.shape == (batch, n_classes)
    print("KERNEL_OK")
</pallas_src>

<mosaic_0001>
module attributes {stable_mosaic.version = 11 : i64} {
  func.func @kernel(%arg0: memref<8x8x32xf32, #tpu.memory_space<vmem>>, %arg1: memref<32x96xf32, #tpu.memory_space<vmem>>, %arg2: memref<32x96xf32, #tpu.memory_space<vmem>>, %arg3: memref<1x96xf32, #tpu.memory_space<vmem>>, %arg4: memref<1x96xf32, #tpu.memory_space<vmem>>, %arg5: memref<32x96xf32, #tpu.memory_space<vmem>>, %arg6: memref<32x96xf32, #tpu.memory_space<vmem>>, %arg7: memref<1x96xf32, #tpu.memory_space<vmem>>, %arg8: memref<1x96xf32, #tpu.memory_space<vmem>>, %arg9: memref<32x8xf32, #tpu.memory_space<vmem>>, %arg10: memref<1x8xf32, #tpu.memory_space<vmem>>, %arg11: memref<8x8xf32, #tpu.memory_space<vmem>>) attributes {dimension_semantics = [], scalar_prefetch = 0 : i64, scratch_operands = 0 : i64, tpu.core_type = #tpu.core_type<tc>} {
    %c0 = arith.constant 0 : index
    %c0_0 = arith.constant 0 : index
    %c0_1 = arith.constant 0 : index
    %0 = vector.load %arg0[%c0, %c0_0, %c0_1] : memref<8x8x32xf32, #tpu.memory_space<vmem>>, vector<8x8x32xf32>
    %1 = vector.shape_cast %0 : vector<8x8x32xf32> to vector<64x32xf32>
    %c0_2 = arith.constant 0 : index
    %c0_3 = arith.constant 0 : index
    %2 = vector.load %arg1[%c0_2, %c0_3] : memref<32x96xf32, #tpu.memory_space<vmem>>, vector<32x96xf32>
    %c0_4 = arith.constant 0 : index
    %c0_5 = arith.constant 0 : index
    %3 = vector.load %arg2[%c0_4, %c0_5] : memref<32x96xf32, #tpu.memory_space<vmem>>, vector<32x96xf32>
    %c0_6 = arith.constant 0 : index
    %c0_7 = arith.constant 0 : index
    %4 = vector.load %arg3[%c0_6, %c0_7] : memref<1x96xf32, #tpu.memory_space<vmem>>, vector<1x96xf32>
    %c0_8 = arith.constant 0 : index
    %c0_9 = arith.constant 0 : index
    %5 = vector.load %arg4[%c0_8, %c0_9] : memref<1x96xf32, #tpu.memory_space<vmem>>, vector<1x96xf32>
    %cst = arith.constant dense<0.000000e+00> : vector<64x96xf32>
    %6 = tpu.matmul %1, %2, %cst {dimension_numbers = #tpu.dot_dimension_numbers<[1], [0], [0], [1], [0, 0, 1, 1], [], []>} : vector<64x32xf32>, vector<32x96xf32>, vector<64x96xf32> -> vector<64x96xf32>
    %7 = vector.broadcast %4 : vector<1x96xf32> to vector<64x96xf32>
    %8 = arith.addf %6, %7 : vector<64x96xf32>
    %cst_10 = arith.constant 0.000000e+00 : f32
    %9 = vector.broadcast %cst_10 : f32 to vector<8x32xf32>
    %10 = vector.extract_strided_slice %8 {offsets = [0, 0], sizes = [8, 96], strides = [1, 1]} : vector<64x96xf32> to vector<8x96xf32>
    %cst_11 = arith.constant dense<0.000000e+00> : vector<8x96xf32>
    %11 = tpu.matmul %9, %3, %cst_11 {dimension_numbers = #tpu.dot_dimension_numbers<[1], [0], [0], [1], [0, 0, 1, 1], [], []>} : vector<8x32xf32>, vector<32x96xf32>, vector<8x96xf32> -> vector<8x96xf32>
    %12 = vector.broadcast %5 : vector<1x96xf32> to vector<8x96xf32>
    %13 = arith.addf %11, %12 : vector<8x96xf32>
    %14 = vector.extract_strided_slice %10 {offsets = [0, 0], sizes = [8, 32], strides = [1, 1]} : vector<8x96xf32> to vector<8x32xf32>
    %15 = vector.extract_strided_slice %13 {offsets = [0, 0], sizes = [8, 32], strides = [1, 1]} : vector<8x96xf32> to vector<8x32xf32>
    %16 = arith.addf %14, %15 : vector<8x32xf32>
    %17 = arith.negf %16 : vector<8x32xf32>
    %18 = math.exp %17 : vector<8x32xf32>
    %cst_12 = arith.constant 1.000000e+00 : f32
    %19 = vector.broadcast %cst_12 : f32 to vector<8x32xf32>
    %20 = arith.addf %19, %18 : vector<8x32xf32>
    %21 = arith.divf %19, %20 : vector<8x32xf32>
    %22 = vector.extract_strided_slice %10 {offsets = [0, 32], sizes = [8, 32], strides = [1, 1]} : vector<8x96xf32> to vector<8x32xf32>
    %23 = vector.extract_strided_slice %13 {offsets = [0, 32], sizes = [8, 32], strides = [1, 1]} : vector<8x96xf32> to vector<8x32xf32>
    %24 = arith.addf %22, %23 : vector<8x32xf32>
    %25 = arith.negf %24 : vector<8x32xf32>
    %26 = math.exp %25 : vector<8x32xf32>
    %cst_13 = arith.constant 1.000000e+00 : f32
    %27 = vector.broadcast %cst_13 : f32 to vector<8x32xf32>
    %28 = arith.addf %27, %26 : vector<8x32xf32>
    %29 = arith.divf %27, %28 : vector<8x32xf32>
    %30 = vector.extract_strided_slice %10 {offsets = [0, 64], sizes = [8, 32], strides = [1, 1]} : vector<8x96xf32> to vector<8x32xf32>
    %31 = vector.extract_strided_slice %13 {offsets = [0, 64], sizes = [8, 32], strides = [1, 1]} : vector<8x96xf32> to vector<8x32xf32>
    %32 = arith.mulf %21, %31 : vector<8x32xf32>
    %33 = arith.addf %30, %32 : vector<8x32xf32>
    %34 = math.tanh %33 : vector<8x32xf32>
    %cst_14 = arith.constant 1.000000e+00 : f32
    %35 = vector.broadcast %cst_14 : f32 to vector<8x32xf32>
    %36 = arith.subf %35, %29 : vector<8x32xf32>
    %37 = arith.mulf %36, %34 : vector<8x32xf32>
    %38 = arith.mulf %29, %9 : vector<8x32xf32>
    %39 = arith.addf %37, %38 : vector<8x32xf32>
    %40 = vector.extract_strided_slice %8 {offsets = [8, 0], sizes = [8, 96], strides = [1, 1]} : vector<64x96xf32> to vector<8x96xf32>
    %cst_15 = arith.constant dense<0.000000e+00> : vector<8x96xf32>
    %41 = tpu.matmul %39, %3, %cst_15 {dimension_numbers = #tpu.dot_dimension_numbers<[1], [0], [0], [1], [0, 0, 1, 1], [], []>} : vector<8x32xf32>, vector<32x96xf32>, vector<8x96xf32> -> vector<8x96xf32>
    %42 = vector.broadcast %5 : vector<1x96xf32> to vector<8x96xf32>
    %43 = arith.addf %41, %42 : vector<8x96xf32>
    %44 = vector.extract_strided_slice %40 {offsets = [0, 0], sizes = [8, 32], strides = [1, 1]} : vector<8x96xf32> to vector<8x32xf32>
    %45 = vector.extract_strided_slice %43 {offsets = [0, 0], sizes = [8, 32], strides = [1, 1]} : vector<8x96xf32> to vector<8x32xf32>
    %46 = arith.addf %44, %45 : vector<8x32xf32>
    %47 = arith.negf %46 : vector<8x32xf32>
    %48 = math.exp %47 : vector<8x32xf32>
    %cst_16 = arith.constant 1.000000e+00 : f32
    %49 = vector.broadcast %cst_16 : f32 to vector<8x32xf32>
    %50 = arith.addf %49, %48 : vector<8x32xf32>
    %51 = arith.divf %49, %50 : vector<8x32xf32>
    %52 = vector.extract_strided_slice %40 {offsets = [0, 32], sizes = [8, 32], strides = [1, 1]} : vector<8x96xf32> to vector<8x32xf32>
    %53 = vector.extract_strided_slice %43 {offsets = [0, 32], sizes = [8, 32], strides = [1, 1]} : vector<8x96xf32> to vector<8x32xf32>
    %54 = arith.addf %52, %53 : vector<8x32xf32>
    %55 = arith.negf %54 : vector<8x32xf32>
    %56 = math.exp %55 : vector<8x32xf32>
    %cst_17 = arith.constant 1.000000e+00 : f32
    %57 = vector.broadcast %cst_17 : f32 to vector<8x32xf32>
    %58 = arith.addf %57, %56 : vector<8x32xf32>
    %59 = arith.divf %57, %58 : vector<8x32xf32>
    %60 = vector.extract_strided_slice %40 {offsets = [0, 64], sizes = [8, 32], strides = [1, 1]} : vector<8x96xf32> to vector<8x32xf32>
    %61 = vector.extract_strided_slice %43 {offsets = [0, 64], sizes = [8, 32], strides = [1, 1]} : vector<8x96xf32> to vector<8x32xf32>
    %62 = arith.mulf %51, %61 : vector<8x32xf32>
    %63 = arith.addf %60, %62 : vector<8x32xf32>
    %64 = math.tanh %63 : vector<8x32xf32>
    %cst_18 = arith.constant 1.000000e+00 : f32
    %65 = vector.broadcast %cst_18 : f32 to vector<8x32xf32>
    %66 = arith.subf %65, %59 : vector<8x32xf32>
    %67 = arith.mulf %66, %64 : vector<8x32xf32>
    %68 = arith.mulf %59, %39 : vector<8x32xf32>
    %69 = arith.addf %67, %68 : vector<8x32xf32>
    %70 = vector.extract_strided_slice %8 {offsets = [16, 0], sizes = [8, 96], strides = [1, 1]} : vector<64x96xf32> to vector<8x96xf32>
    %cst_19 = arith.constant dense<0.000000e+00> : vector<8x96xf32>
    %71 = tpu.matmul %69, %3, %cst_19 {dimension_numbers = #tpu.dot_dimension_numbers<[1], [0], [0], [1], [0, 0, 1, 1], [], []>} : vector<8x32xf32>, vector<32x96xf32>, vector<8x96xf32> -> vector<8x96xf32>
    %72 = vector.broadcast %5 : vector<1x96xf32> to vector<8x96xf32>
    %73 = arith.addf %71, %72 : vector<8x96xf32>
    %74 = vector.extract_strided_slice %70 {offsets = [0, 0], sizes = [8, 32], strides = [1, 1]} : vector<8x96xf32> to vector<8x32xf32>
    %75 = vector.extract_strided_slice %73 {offsets = [0, 0], sizes = [8, 32], strides = [1, 1]} : vector<8x96xf32> to vector<8x32xf32>
    %76 = arith.addf %74, %75 : vector<8x32xf32>
    %77 = arith.negf %76 : vector<8x32xf32>
    %78 = math.exp %77 : vector<8x32xf32>
    %cst_20 = arith.constant 1.000000e+00 : f32
    %79 = vector.broadcast %cst_20 : f32 to vector<8x32xf32>
    %80 = arith.addf %79, %78 : vector<8x32xf32>
    %81 = arith.divf %79, %80 : vector<8x32xf32>
    %82 = vector.extract_strided_slice %70 {offsets = [0, 32], sizes = [8, 32], strides = [1, 1]} : vector<8x96xf32> to vector<8x32xf32>
    %83 = vector.extract_strided_slice %73 {offsets = [0, 32], sizes = [8, 32], strides = [1, 1]} : vector<8x96xf32> to vector<8x32xf32>
    %84 = arith.addf %82, %83 : vector<8x32xf32>
    %85 = arith.negf %84 : vector<8x32xf32>
    %86 = math.exp %85 : vector<8x32xf32>
    %cst_21 = arith.constant 1.000000e+00 : f32
    %87 = vector.broadcast %cst_21 : f32 to vector<8x32xf32>
    %88 = arith.addf %87, %86 : vector<8x32xf32>
    %89 = arith.divf %87, %88 : vector<8x32xf32>
    %90 = vector.extract_strided_slice %70 {offsets = [0, 64], sizes = [8, 32], strides = [1, 1]} : vector<8x96xf32> to vector<8x32xf32>
    %91 = vector.extract_strided_slice %73 {offsets = [0, 64], sizes = [8, 32], strides = [1, 1]} : vector<8x96xf32> to vector<8x32xf32>
    %92 = arith.mulf %81, %91 : vector<8x32xf32>
    %93 = arith.addf %90, %92 : vector<8x32xf32>
    %94 = math.tanh %93 : vector<8x32xf32>
    %cst_22 = arith.constant 1.000000e+00 : f32
    %95 = vector.broadcast %cst_22 : f32 to vector<8x32xf32>
    %96 = arith.subf %95, %89 : vector<8x32xf32>
    %97 = arith.mulf %96, %94 : vector<8x32xf32>
    %98 = arith.mulf %89, %69 : vector<8x32xf32>
    %99 = arith.addf %97, %98 : vector<8x32xf32>
    %100 = vector.extract_strided_slice %8 {offsets = [24, 0], sizes = [8, 96], strides = [1, 1]} : vector<64x96xf32> to vector<8x96xf32>
    %cst_23 = arith.constant dense<0.000000e+00> : vector<8x96xf32>
    %101 = tpu.matmul %99, %3, %cst_23 {dimension_numbers = #tpu.dot_dimension_numbers<[1], [0], [0], [1], [0, 0, 1, 1], [], []>} : vector<8x32xf32>, vector<32x96xf32>, vector<8x96xf32> -> vector<8x96xf32>
    %102 = vector.broadcast %5 : vector<1x96xf32> to vector<8x96xf32>
    %103 = arith.addf %101, %102 : vector<8x96xf32>
    %104 = vector.extract_strided_slice %100 {offsets = [0, 0], sizes = [8, 32], strides = [1, 1]} : vector<8x96xf32> to vector<8x32xf32>
    %105 = vector.extract_strided_slice %103 {offsets = [0, 0], sizes = [8, 32], strides = [1, 1]} : vector<8x96xf32> to vector<8x32xf32>
    %106 = arith.addf %104, %105 : vector<8x32xf32>
    %107 = arith.negf %106 : vector<8x32xf32>
    %108 = math.exp %107 : vector<8x32xf32>
    %cst_24 = arith.constant 1.000000e+00 : f32
    %109 = vector.broadcast %cst_24 : f32 to vector<8x32xf32>
    %110 = arith.addf %109, %108 : vector<8x32xf32>
    %111 = arith.divf %109, %110 : vector<8x32xf32>
    %112 = vector.extract_strided_slice %100 {offsets = [0, 32], sizes = [8, 32], strides = [1, 1]} : vector<8x96xf32> to vector<8x32xf32>
    %113 = vector.extract_strided_slice %103 {offsets = [0, 32], sizes = [8, 32], strides = [1, 1]} : vector<8x96xf32> to vector<8x32xf32>
    %114 = arith.addf %112, %113 : vector<8x32xf32>
    %115 = arith.negf %114 : vector<8x32xf32>
    %116 = math.exp %115 : vector<8x32xf32>
    %cst_25 = arith.constant 1.000000e+00 : f32
    %117 = vector.broadcast %cst_25 : f32 to vector<8x32xf32>
    %118 = arith.addf %117, %116 : vector<8x32xf32>
    %119 = arith.divf %117, %118 : vector<8x32xf32>
    %120 = vector.extract_strided_slice %100 {offsets = [0, 64], sizes = [8, 32], strides = [1, 1]} : vector<8x96xf32> to vector<8x32xf32>
    %121 = vector.extract_strided_slice %103 {offsets = [0, 64], sizes = [8, 32], strides = [1, 1]} : vector<8x96xf32> to vector<8x32xf32>
    %122 = arith.mulf %111, %121 : vector<8x32xf32>
    %123 = arith.addf %120, %122 : vector<8x32xf32>
    %124 = math.tanh %123 : vector<8x32xf32>
    %cst_26 = arith.constant 1.000000e+00 : f32
    %125 = vector.broadcast %cst_26 : f32 to vector<8x32xf32>
    %126 = arith.subf %125, %119 : vector<8x32xf32>
    %127 = arith.mulf %126, %124 : vector<8x32xf32>
    %128 = arith.mulf %119, %99 : vector<8x32xf32>
    %129 = arith.addf %127, %128 : vector<8x32xf32>
    %130 = vector.extract_strided_slice %8 {offsets = [32, 0], sizes = [8, 96], strides = [1, 1]} : vector<64x96xf32> to vector<8x96xf32>
    %cst_27 = arith.constant dense<0.000000e+00> : vector<8x96xf32>
    %131 = tpu.matmul %129, %3, %cst_27 {dimension_numbers = #tpu.dot_dimension_numbers<[1], [0], [0], [1], [0, 0, 1, 1], [], []>} : vector<8x32xf32>, vector<32x96xf32>, vector<8x96xf32> -> vector<8x96xf32>
    %132 = vector.broadcast %5 : vector<1x96xf32> to vector<8x96xf32>
    %133 = arith.addf %131, %132 : vector<8x96xf32>
    %134 = vector.extract_strided_slice %130 {offsets = [0, 0], sizes = [8, 32], strides = [1, 1]} : vector<8x96xf32> to vector<8x32xf32>
    %135 = vector.extract_strided_slice %133 {offsets = [0, 0], sizes = [8, 32], strides = [1, 1]} : vector<8x96xf32> to vector<8x32xf32>
    %136 = arith.addf %134, %135 : vector<8x32xf32>
    %137 = arith.negf %136 : vector<8x32xf32>
    %138 = math.exp %137 : vector<8x32xf32>
    %cst_28 = arith.constant 1.000000e+00 : f32
    %139 = vector.broadcast %cst_28 : f32 to vector<8x32xf32>
    %140 = arith.addf %139, %138 : vector<8x32xf32>
    %141 = arith.divf %139, %140 : vector<8x32xf32>
    %142 = vector.extract_strided_slice %130 {offsets = [0, 32], sizes = [8, 32], strides = [1, 1]} : vector<8x96xf32> to vector<8x32xf32>
    %143 = vector.extract_strided_slice %133 {offsets = [0, 32], sizes = [8, 32], strides = [1, 1]} : vector<8x96xf32> to vector<8x32xf32>
    %144 = arith.addf %142, %143 : vector<8x32xf32>
    %145 = arith.negf %144 : vector<8x32xf32>
    %146 = math.exp %145 : vector<8x32xf32>
    %cst_29 = arith.constant 1.000000e+00 : f32
    %147 = vector.broadcast %cst_29 : f32 to vector<8x32xf32>
    %148 = arith.addf %147, %146 : vector<8x32xf32>
    %149 = arith.divf %147, %148 : vector<8x32xf32>
    %150 = vector.extract_strided_slice %130 {offsets = [0, 64], sizes = [8, 32], strides = [1, 1]} : vector<8x96xf32> to vector<8x32xf32>
    %151 = vector.extract_strided_slice %133 {offsets = [0, 64], sizes = [8, 32], strides = [1, 1]} : vector<8x96xf32> to vector<8x32xf32>
    %152 = arith.mulf %141, %151 : vector<8x32xf32>
    %153 = arith.addf %150, %152 : vector<8x32xf32>
    %154 = math.tanh %153 : vector<8x32xf32>
    %cst_30 = arith.constant 1.000000e+00 : f32
    %155 = vector.broadcast %cst_30 : f32 to vector<8x32xf32>
    %156 = arith.subf %155, %149 : vector<8x32xf32>
    %157 = arith.mulf %156, %154 : vector<8x32xf32>
    %158 = arith.mulf %149, %129 : vector<8x32xf32>
    %159 = arith.addf %157, %158 : vector<8x32xf32>
    %160 = vector.extract_strided_slice %8 {offsets = [40, 0], sizes = [8, 96], strides = [1, 1]} : vector<64x96xf32> to vector<8x96xf32>
    %cst_31 = arith.constant dense<0.000000e+00> : vector<8x96xf32>
    %161 = tpu.matmul %159, %3, %cst_31 {dimension_numbers = #tpu.dot_dimension_numbers<[1], [0], [0], [1], [0, 0, 1, 1], [], []>} : vector<8x32xf32>, vector<32x96xf32>, vector<8x96xf32> -> vector<8x96xf32>
    %162 = vector.broadcast %5 : vector<1x96xf32> to vector<8x96xf32>
    %163 = arith.addf %161, %162 : vector<8x96xf32>
    %164 = vector.extract_strided_slice %160 {offsets = [0, 0], sizes = [8, 32], strides = [1, 1]} : vector<8x96xf32> to vector<8x32xf32>
    %165 = vector.extract_strided_slice %163 {offsets = [0, 0], sizes = [8, 32], strides = [1, 1]} : vector<8x96xf32> to vector<8x32xf32>
    %166 = arith.addf %164, %165 : vector<8x32xf32>
    %167 = arith.negf %166 : vector<8x32xf32>
    %168 = math.exp %167 : vector<8x32xf32>
    %cst_32 = arith.constant 1.000000e+00 : f32
    %169 = vector.broadcast %cst_32 : f32 to vector<8x32xf32>
    %170 = arith.addf %169, %168 : vector<8x32xf32>
    %171 = arith.divf %169, %170 : vector<8x32xf32>
    %172 = vector.extract_strided_slice %160 {offsets = [0, 32], sizes = [8, 32], strides = [1, 1]} : vector<8x96xf32> to vector<8x32xf32>
    %173 = vector.extract_strided_slice %163 {offsets = [0, 32], sizes = [8, 32], strides = [1, 1]} : vector<8x96xf32> to vector<8x32xf32>
    %174 = arith.addf %172, %173 : vector<8x32xf32>
    %175 = arith.negf %174 : vector<8x32xf32>
    %176 = math.exp %175 : vector<8x32xf32>
    %cst_33 = arith.constant 1.000000e+00 : f32
    %177 = vector.broadcast %cst_33 : f32 to vector<8x32xf32>
    %178 = arith.addf %177, %176 : vector<8x32xf32>
    %179 = arith.divf %177, %178 : vector<8x32xf32>
    %180 = vector.extract_strided_slice %160 {offsets = [0, 64], sizes = [8, 32], strides = [1, 1]} : vector<8x96xf32> to vector<8x32xf32>
    %181 = vector.extract_strided_slice %163 {offsets = [0, 64], sizes = [8, 32], strides = [1, 1]} : vector<8x96xf32> to vector<8x32xf32>
    %182 = arith.mulf %171, %181 : vector<8x32xf32>
    %183 = arith.addf %180, %182 : vector<8x32xf32>
    %184 = math.tanh %183 : vector<8x32xf32>
    %cst_34 = arith.constant 1.000000e+00 : f32
    %185 = vector.broadcast %cst_34 : f32 to vector<8x32xf32>
    %186 = arith.subf %185, %179 : vector<8x32xf32>
    %187 = arith.mulf %186, %184 : vector<8x32xf32>
    %188 = arith.mulf %179, %159 : vector<8x32xf32>
    %189 = arith.addf %187, %188 : vector<8x32xf32>
    %190 = vector.extract_strided_slice %8 {offsets = [48, 0], sizes = [8, 96], strides = [1, 1]} : vector<64x96xf32> to vector<8x96xf32>
    %cst_35 = arith.constant dense<0.000000e+00> : vector<8x96xf32>
    %191 = tpu.matmul %189, %3, %cst_35 {dimension_numbers = #tpu.dot_dimension_numbers<[1], [0], [0], [1], [0, 0, 1, 1], [], []>} : vector<8x32xf32>, vector<32x96xf32>, vector<8x96xf32> -> vector<8x96xf32>
    %192 = vector.broadcast %5 : vector<1x96xf32> to vector<8x96xf32>
    %193 = arith.addf %191, %192 : vector<8x96xf32>
    %194 = vector.extract_strided_slice %190 {offsets = [0, 0], sizes = [8, 32], strides = [1, 1]} : vector<8x96xf32> to vector<8x32xf32>
    %195 = vector.extract_strided_slice %193 {offsets = [0, 0], sizes = [8, 32], strides = [1, 1]} : vector<8x96xf32> to vector<8x32xf32>
    %196 = arith.addf %194, %195 : vector<8x32xf32>
    %197 = arith.negf %196 : vector<8x32xf32>
    %198 = math.exp %197 : vector<8x32xf32>
    %cst_36 = arith.constant 1.000000e+00 : f32
    %199 = vector.broadcast %cst_36 : f32 to vector<8x32xf32>
    %200 = arith.addf %199, %198 : vector<8x32xf32>
    %201 = arith.divf %199, %200 : vector<8x32xf32>
    %202 = vector.extract_strided_slice %190 {offsets = [0, 32], sizes = [8, 32], strides = [1, 1]} : vector<8x96xf32> to vector<8x32xf32>
    %203 = vector.extract_strided_slice %193 {offsets = [0, 32], sizes = [8, 32], strides = [1, 1]} : vector<8x96xf32> to vector<8x32xf32>
    %204 = arith.addf %202, %203 : vector<8x32xf32>
    %205 = arith.negf %204 : vector<8x32xf32>
    %206 = math.exp %205 : vector<8x32xf32>
    %cst_37 = arith.constant 1.000000e+00 : f32
    %207 = vector.broadcast %cst_37 : f32 to vector<8x32xf32>
    %208 = arith.addf %207, %206 : vector<8x32xf32>
    %209 = arith.divf %207, %208 : vector<8x32xf32>
    %210 = vector.extract_strided_slice %190 {offsets = [0, 64], sizes = [8, 32], strides = [1, 1]} : vector<8x96xf32> to vector<8x32xf32>
    %211 = vector.extract_strided_slice %193 {offsets = [0, 64], sizes = [8, 32], strides = [1, 1]} : vector<8x96xf32> to vector<8x32xf32>
    %212 = arith.mulf %201, %211 : vector<8x32xf32>
    %213 = arith.addf %210, %212 : vector<8x32xf32>
    %214 = math.tanh %213 : vector<8x32xf32>
    %cst_38 = arith.constant 1.000000e+00 : f32
    %215 = vector.broadcast %cst_38 : f32 to vector<8x32xf32>
    %216 = arith.subf %215, %209 : vector<8x32xf32>
    %217 = arith.mulf %216, %214 : vector<8x32xf32>
    %218 = arith.mulf %209, %189 : vector<8x32xf32>
    %219 = arith.addf %217, %218 : vector<8x32xf32>
    %220 = vector.extract_strided_slice %8 {offsets = [56, 0], sizes = [8, 96], strides = [1, 1]} : vector<64x96xf32> to vector<8x96xf32>
    %cst_39 = arith.constant dense<0.000000e+00> : vector<8x96xf32>
    %221 = tpu.matmul %219, %3, %cst_39 {dimension_numbers = #tpu.dot_dimension_numbers<[1], [0], [0], [1], [0, 0, 1, 1], [], []>} : vector<8x32xf32>, vector<32x96xf32>, vector<8x96xf32> -> vector<8x96xf32>
    %222 = vector.broadcast %5 : vector<1x96xf32> to vector<8x96xf32>
    %223 = arith.addf %221, %222 : vector<8x96xf32>
    %224 = vector.extract_strided_slice %220 {offsets = [0, 0], sizes = [8, 32], strides = [1, 1]} : vector<8x96xf32> to vector<8x32xf32>
    %225 = vector.extract_strided_slice %223 {offsets = [0, 0], sizes = [8, 32], strides = [1, 1]} : vector<8x96xf32> to vector<8x32xf32>
    %226 = arith.addf %224, %225 : vector<8x32xf32>
    %227 = arith.negf %226 : vector<8x32xf32>
    %228 = math.exp %227 : vector<8x32xf32>
    %cst_40 = arith.constant 1.000000e+00 : f32
    %229 = vector.broadcast %cst_40 : f32 to vector<8x32xf32>
    %230 = arith.addf %229, %228 : vector<8x32xf32>
    %231 = arith.divf %229, %230 : vector<8x32xf32>
    %232 = vector.extract_strided_slice %220 {offsets = [0, 32], sizes = [8, 32], strides = [1, 1]} : vector<8x96xf32> to vector<8x32xf32>
    %233 = vector.extract_strided_slice %223 {offsets = [0, 32], sizes = [8, 32], strides = [1, 1]} : vector<8x96xf32> to vector<8x32xf32>
    %234 = arith.addf %232, %233 : vector<8x32xf32>
    %235 = arith.negf %234 : vector<8x32xf32>
    %236 = math.exp %235 : vector<8x32xf32>
    %cst_41 = arith.constant 1.000000e+00 : f32
    %237 = vector.broadcast %cst_41 : f32 to vector<8x32xf32>
    %238 = arith.addf %237, %236 : vector<8x32xf32>
    %239 = arith.divf %237, %238 : vector<8x32xf32>
    %240 = vector.extract_strided_slice %220 {offsets = [0, 64], sizes = [8, 32], strides = [1, 1]} : vector<8x96xf32> to vector<8x32xf32>
    %241 = vector.extract_strided_slice %223 {offsets = [0, 64], sizes = [8, 32], strides = [1, 1]} : vector<8x96xf32> to vector<8x32xf32>
    %242 = arith.mulf %231, %241 : vector<8x32xf32>
    %243 = arith.addf %240, %242 : vector<8x32xf32>
    %244 = math.tanh %243 : vector<8x32xf32>
    %cst_42 = arith.constant 1.000000e+00 : f32
    %245 = vector.broadcast %cst_42 : f32 to vector<8x32xf32>
    %246 = arith.subf %245, %239 : vector<8x32xf32>
    %247 = arith.mulf %246, %244 : vector<8x32xf32>
    %248 = arith.mulf %239, %219 : vector<8x32xf32>
    %249 = arith.addf %247, %248 : vector<8x32xf32>
    %250 = tpu.concatenate %39, %69, %99, %129, %159, %189, %219, %249 in 0 : vector<8x32xf32>, vector<8x32xf32>, vector<8x32xf32>, vector<8x32xf32>, vector<8x32xf32>, vector<8x32xf32>, vector<8x32xf32>, vector<8x32xf32> -> vector<64x32xf32>
    %c0_43 = arith.constant 0 : index
    %c0_44 = arith.constant 0 : index
    %251 = vector.load %arg5[%c0_43, %c0_44] : memref<32x96xf32, #tpu.memory_space<vmem>>, vector<32x96xf32>
    %c0_45 = arith.constant 0 : index
    %c0_46 = arith.constant 0 : index
    %252 = vector.load %arg6[%c0_45, %c0_46] : memref<32x96xf32, #tpu.memory_space<vmem>>, vector<32x96xf32>
    %c0_47 = arith.constant 0 : index
    %c0_48 = arith.constant 0 : index
    %253 = vector.load %arg7[%c0_47, %c0_48] : memref<1x96xf32, #tpu.memory_space<vmem>>, vector<1x96xf32>
    %c0_49 = arith.constant 0 : index
    %c0_50 = arith.constant 0 : index
    %254 = vector.load %arg8[%c0_49, %c0_50] : memref<1x96xf32, #tpu.memory_space<vmem>>, vector<1x96xf32>
    %cst_51 = arith.constant dense<0.000000e+00> : vector<64x96xf32>
    %255 = tpu.matmul %250, %251, %cst_51 {dimension_numbers = #tpu.dot_dimension_numbers<[1], [0], [0], [1], [0, 0, 1, 1], [], []>} : vector<64x32xf32>, vector<32x96xf32>, vector<64x96xf32> -> vector<64x96xf32>
    %256 = vector.broadcast %253 : vector<1x96xf32> to vector<64x96xf32>
    %257 = arith.addf %255, %256 : vector<64x96xf32>
    %cst_52 = arith.constant 0.000000e+00 : f32
    %258 = vector.broadcast %cst_52 : f32 to vector<8x32xf32>
    %259 = vector.extract_strided_slice %257 {offsets = [0, 0], sizes = [8, 96], strides = [1, 1]} : vector<64x96xf32> to vector<8x96xf32>
    %cst_53 = arith.constant dense<0.000000e+00> : vector<8x96xf32>
    %260 = tpu.matmul %258, %252, %cst_53 {dimension_numbers = #tpu.dot_dimension_numbers<[1], [0], [0], [1], [0, 0, 1, 1], [], []>} : vector<8x32xf32>, vector<32x96xf32>, vector<8x96xf32> -> vector<8x96xf32>
    %261 = vector.broadcast %254 : vector<1x96xf32> to vector<8x96xf32>
    %262 = arith.addf %260, %261 : vector<8x96xf32>
    %263 = vector.extract_strided_slice %259 {offsets = [0, 0], sizes = [8, 32], strides = [1, 1]} : vector<8x96xf32> to vector<8x32xf32>
    %264 = vector.extract_strided_slice %262 {offsets = [0, 0], sizes = [8, 32], strides = [1, 1]} : vector<8x96xf32> to vector<8x32xf32>
    %265 = arith.addf %263, %264 : vector<8x32xf32>
    %266 = arith.negf %265 : vector<8x32xf32>
    %267 = math.exp %266 : vector<8x32xf32>
    %cst_54 = arith.constant 1.000000e+00 : f32
    %268 = vector.broadcast %cst_54 : f32 to vector<8x32xf32>
    %269 = arith.addf %268, %267 : vector<8x32xf32>
    %270 = arith.divf %268, %269 : vector<8x32xf32>
    %271 = vector.extract_strided_slice %259 {offsets = [0, 32], sizes = [8, 32], strides = [1, 1]} : vector<8x96xf32> to vector<8x32xf32>
    %272 = vector.extract_strided_slice %262 {offsets = [0, 32], sizes = [8, 32], strides = [1, 1]} : vector<8x96xf32> to vector<8x32xf32>
    %273 = arith.addf %271, %272 : vector<8x32xf32>
    %274 = arith.negf %273 : vector<8x32xf32>
    %275 = math.exp %274 : vector<8x32xf32>
    %cst_55 = arith.constant 1.000000e+00 : f32
    %276 = vector.broadcast %cst_55 : f32 to vector<8x32xf32>
    %277 = arith.addf %276, %275 : vector<8x32xf32>
    %278 = arith.divf %276, %277 : vector<8x32xf32>
    %279 = vector.extract_strided_slice %259 {offsets = [0, 64], sizes = [8, 32], strides = [1, 1]} : vector<8x96xf32> to vector<8x32xf32>
    %280 = vector.extract_strided_slice %262 {offsets = [0, 64], sizes = [8, 32], strides = [1, 1]} : vector<8x96xf32> to vector<8x32xf32>
    %281 = arith.mulf %270, %280 : vector<8x32xf32>
    %282 = arith.addf %279, %281 : vector<8x32xf32>
    %283 = math.tanh %282 : vector<8x32xf32>
    %cst_56 = arith.constant 1.000000e+00 : f32
    %284 = vector.broadcast %cst_56 : f32 to vector<8x32xf32>
    %285 = arith.subf %284, %278 : vector<8x32xf32>
    %286 = arith.mulf %285, %283 : vector<8x32xf32>
    %287 = arith.mulf %278, %258 : vector<8x32xf32>
    %288 = arith.addf %286, %287 : vector<8x32xf32>
    %289 = vector.extract_strided_slice %257 {offsets = [8, 0], sizes = [8, 96], strides = [1, 1]} : vector<64x96xf32> to vector<8x96xf32>
    %cst_57 = arith.constant dense<0.000000e+00> : vector<8x96xf32>
    %290 = tpu.matmul %288, %252, %cst_57 {dimension_numbers = #tpu.dot_dimension_numbers<[1], [0], [0], [1], [0, 0, 1, 1], [], []>} : vector<8x32xf32>, vector<32x96xf32>, vector<8x96xf32> -> vector<8x96xf32>
    %291 = vector.broadcast %254 : vector<1x96xf32> to vector<8x96xf32>
    %292 = arith.addf %290, %291 : vector<8x96xf32>
    %293 = vector.extract_strided_slice %289 {offsets = [0, 0], sizes = [8, 32], strides = [1, 1]} : vector<8x96xf32> to vector<8x32xf32>
    %294 = vector.extract_strided_slice %292 {offsets = [0, 0], sizes = [8, 32], strides = [1, 1]} : vector<8x96xf32> to vector<8x32xf32>
    %295 = arith.addf %293, %294 : vector<8x32xf32>
    %296 = arith.negf %295 : vector<8x32xf32>
    %297 = math.exp %296 : vector<8x32xf32>
    %cst_58 = arith.constant 1.000000e+00 : f32
    %298 = vector.broadcast %cst_58 : f32 to vector<8x32xf32>
    %299 = arith.addf %298, %297 : vector<8x32xf32>
    %300 = arith.divf %298, %299 : vector<8x32xf32>
    %301 = vector.extract_strided_slice %289 {offsets = [0, 32], sizes = [8, 32], strides = [1, 1]} : vector<8x96xf32> to vector<8x32xf32>
    %302 = vector.extract_strided_slice %292 {offsets = [0, 32], sizes = [8, 32], strides = [1, 1]} : vector<8x96xf32> to vector<8x32xf32>
    %303 = arith.addf %301, %302 : vector<8x32xf32>
    %304 = arith.negf %303 : vector<8x32xf32>
    %305 = math.exp %304 : vector<8x32xf32>
    %cst_59 = arith.constant 1.000000e+00 : f32
    %306 = vector.broadcast %cst_59 : f32 to vector<8x32xf32>
    %307 = arith.addf %306, %305 : vector<8x32xf32>
    %308 = arith.divf %306, %307 : vector<8x32xf32>
    %309 = vector.extract_strided_slice %289 {offsets = [0, 64], sizes = [8, 32], strides = [1, 1]} : vector<8x96xf32> to vector<8x32xf32>
    %310 = vector.extract_strided_slice %292 {offsets = [0, 64], sizes = [8, 32], strides = [1, 1]} : vector<8x96xf32> to vector<8x32xf32>
    %311 = arith.mulf %300, %310 : vector<8x32xf32>
    %312 = arith.addf %309, %311 : vector<8x32xf32>
    %313 = math.tanh %312 : vector<8x32xf32>
    %cst_60 = arith.constant 1.000000e+00 : f32
    %314 = vector.broadcast %cst_60 : f32 to vector<8x32xf32>
    %315 = arith.subf %314, %308 : vector<8x32xf32>
    %316 = arith.mulf %315, %313 : vector<8x32xf32>
    %317 = arith.mulf %308, %288 : vector<8x32xf32>
    %318 = arith.addf %316, %317 : vector<8x32xf32>
    %319 = vector.extract_strided_slice %257 {offsets = [16, 0], sizes = [8, 96], strides = [1, 1]} : vector<64x96xf32> to vector<8x96xf32>
    %cst_61 = arith.constant dense<0.000000e+00> : vector<8x96xf32>
    %320 = tpu.matmul %318, %252, %cst_61 {dimension_numbers = #tpu.dot_dimension_numbers<[1], [0], [0], [1], [0, 0, 1, 1], [], []>} : vector<8x32xf32>, vector<32x96xf32>, vector<8x96xf32> -> vector<8x96xf32>
    %321 = vector.broadcast %254 : vector<1x96xf32> to vector<8x96xf32>
    %322 = arith.addf %320, %321 : vector<8x96xf32>
    %323 = vector.extract_strided_slice %319 {offsets = [0, 0], sizes = [8, 32], strides = [1, 1]} : vector<8x96xf32> to vector<8x32xf32>
    %324 = vector.extract_strided_slice %322 {offsets = [0, 0], sizes = [8, 32], strides = [1, 1]} : vector<8x96xf32> to vector<8x32xf32>
    %325 = arith.addf %323, %324 : vector<8x32xf32>
    %326 = arith.negf %325 : vector<8x32xf32>
    %327 = math.exp %326 : vector<8x32xf32>
    %cst_62 = arith.constant 1.000000e+00 : f32
    %328 = vector.broadcast %cst_62 : f32 to vector<8x32xf32>
    %329 = arith.addf %328, %327 : vector<8x32xf32>
    %330 = arith.divf %328, %329 : vector<8x32xf32>
    %331 = vector.extract_strided_slice %319 {offsets = [0, 32], sizes = [8, 32], strides = [1, 1]} : vector<8x96xf32> to vector<8x32xf32>
    %332 = vector.extract_strided_slice %322 {offsets = [0, 32], sizes = [8, 32], strides = [1, 1]} : vector<8x96xf32> to vector<8x32xf32>
    %333 = arith.addf %331, %332 : vector<8x32xf32>
    %334 = arith.negf %333 : vector<8x32xf32>
    %335 = math.exp %334 : vector<8x32xf32>
    %cst_63 = arith.constant 1.000000e+00 : f32
    %336 = vector.broadcast %cst_63 : f32 to vector<8x32xf32>
    %337 = arith.addf %336, %335 : vector<8x32xf32>
    %338 = arith.divf %336, %337 : vector<8x32xf32>
    %339 = vector.extract_strided_slice %319 {offsets = [0, 64], sizes = [8, 32], strides = [1, 1]} : vector<8x96xf32> to vector<8x32xf32>
    %340 = vector.extract_strided_slice %322 {offsets = [0, 64], sizes = [8, 32], strides = [1, 1]} : vector<8x96xf32> to vector<8x32xf32>
    %341 = arith.mulf %330, %340 : vector<8x32xf32>
    %342 = arith.addf %339, %341 : vector<8x32xf32>
    %343 = math.tanh %342 : vector<8x32xf32>
    %cst_64 = arith.constant 1.000000e+00 : f32
    %344 = vector.broadcast %cst_64 : f32 to vector<8x32xf32>
    %345 = arith.subf %344, %338 : vector<8x32xf32>
    %346 = arith.mulf %345, %343 : vector<8x32xf32>
    %347 = arith.mulf %338, %318 : vector<8x32xf32>
    %348 = arith.addf %346, %347 : vector<8x32xf32>
    %349 = vector.extract_strided_slice %257 {offsets = [24, 0], sizes = [8, 96], strides = [1, 1]} : vector<64x96xf32> to vector<8x96xf32>
    %cst_65 = arith.constant dense<0.000000e+00> : vector<8x96xf32>
    %350 = tpu.matmul %348, %252, %cst_65 {dimension_numbers = #tpu.dot_dimension_numbers<[1], [0], [0], [1], [0, 0, 1, 1], [], []>} : vector<8x32xf32>, vector<32x96xf32>, vector<8x96xf32> -> vector<8x96xf32>
    %351 = vector.broadcast %254 : vector<1x96xf32> to vector<8x96xf32>
    %352 = arith.addf %350, %351 : vector<8x96xf32>
    %353 = vector.extract_strided_slice %349 {offsets = [0, 0], sizes = [8, 32], strides = [1, 1]} : vector<8x96xf32> to vector<8x32xf32>
    %354 = vector.extract_strided_slice %352 {offsets = [0, 0], sizes = [8, 32], strides = [1, 1]} : vector<8x96xf32> to vector<8x32xf32>
    %355 = arith.addf %353, %354 : vector<8x32xf32>
    %356 = arith.negf %355 : vector<8x32xf32>
    %357 = math.exp %356 : vector<8x32xf32>
    %cst_66 = arith.constant 1.000000e+00 : f32
    %358 = vector.broadcast %cst_66 : f32 to vector<8x32xf32>
    %359 = arith.addf %358, %357 : vector<8x32xf32>
    %360 = arith.divf %358, %359 : vector<8x32xf32>
    %361 = vector.extract_strided_slice %349 {offsets = [0, 32], sizes = [8, 32], strides = [1, 1]} : vector<8x96xf32> to vector<8x32xf32>
    %362 = vector.extract_strided_slice %352 {offsets = [0, 32], sizes = [8, 32], strides = [1, 1]} : vector<8x96xf32> to vector<8x32xf32>
    %363 = arith.addf %361, %362 : vector<8x32xf32>
    %364 = arith.negf %363 : vector<8x32xf32>
    %365 = math.exp %364 : vector<8x32xf32>
    %cst_67 = arith.constant 1.000000e+00 : f32
    %366 = vector.broadcast %cst_67 : f32 to vector<8x32xf32>
    %367 = arith.addf %366, %365 : vector<8x32xf32>
    %368 = arith.divf %366, %367 : vector<8x32xf32>
    %369 = vector.extract_strided_slice %349 {offsets = [0, 64], sizes = [8, 32], strides = [1, 1]} : vector<8x96xf32> to vector<8x32xf32>
    %370 = vector.extract_strided_slice %352 {offsets = [0, 64], sizes = [8, 32], strides = [1, 1]} : vector<8x96xf32> to vector<8x32xf32>
    %371 = arith.mulf %360, %370 : vector<8x32xf32>
    %372 = arith.addf %369, %371 : vector<8x32xf32>
    %373 = math.tanh %372 : vector<8x32xf32>
    %cst_68 = arith.constant 1.000000e+00 : f32
    %374 = vector.broadcast %cst_68 : f32 to vector<8x32xf32>
    %375 = arith.subf %374, %368 : vector<8x32xf32>
    %376 = arith.mulf %375, %373 : vector<8x32xf32>
    %377 = arith.mulf %368, %348 : vector<8x32xf32>
    %378 = arith.addf %376, %377 : vector<8x32xf32>
    %379 = vector.extract_strided_slice %257 {offsets = [32, 0], sizes = [8, 96], strides = [1, 1]} : vector<64x96xf32> to vector<8x96xf32>
    %cst_69 = arith.constant dense<0.000000e+00> : vector<8x96xf32>
    %380 = tpu.matmul %378, %252, %cst_69 {dimension_numbers = #tpu.dot_dimension_numbers<[1], [0], [0], [1], [0, 0, 1, 1], [], []>} : vector<8x32xf32>, vector<32x96xf32>, vector<8x96xf32> -> vector<8x96xf32>
    %381 = vector.broadcast %254 : vector<1x96xf32> to vector<8x96xf32>
    %382 = arith.addf %380, %381 : vector<8x96xf32>
    %383 = vector.extract_strided_slice %379 {offsets = [0, 0], sizes = [8, 32], strides = [1, 1]} : vector<8x96xf32> to vector<8x32xf32>
    %384 = vector.extract_strided_slice %382 {offsets = [0, 0], sizes = [8, 32], strides = [1, 1]} : vector<8x96xf32> to vector<8x32xf32>
    %385 = arith.addf %383, %384 : vector<8x32xf32>
    %386 = arith.negf %385 : vector<8x32xf32>
    %387 = math.exp %386 : vector<8x32xf32>
    %cst_70 = arith.constant 1.000000e+00 : f32
    %388 = vector.broadcast %cst_70 : f32 to vector<8x32xf32>
    %389 = arith.addf %388, %387 : vector<8x32xf32>
    %390 = arith.divf %388, %389 : vector<8x32xf32>
    %391 = vector.extract_strided_slice %379 {offsets = [0, 32], sizes = [8, 32], strides = [1, 1]} : vector<8x96xf32> to vector<8x32xf32>
    %392 = vector.extract_strided_slice %382 {offsets = [0, 32], sizes = [8, 32], strides = [1, 1]} : vector<8x96xf32> to vector<8x32xf32>
    %393 = arith.addf %391, %392 : vector<8x32xf32>
    %394 = arith.negf %393 : vector<8x32xf32>
    %395 = math.exp %394 : vector<8x32xf32>
    %cst_71 = arith.constant 1.000000e+00 : f32
    %396 = vector.broadcast %cst_71 : f32 to vector<8x32xf32>
    %397 = arith.addf %396, %395 : vector<8x32xf32>
    %398 = arith.divf %396, %397 : vector<8x32xf32>
    %399 = vector.extract_strided_slice %379 {offsets = [0, 64], sizes = [8, 32], strides = [1, 1]} : vector<8x96xf32> to vector<8x32xf32>
    %400 = vector.extract_strided_slice %382 {offsets = [0, 64], sizes = [8, 32], strides = [1, 1]} : vector<8x96xf32> to vector<8x32xf32>
    %401 = arith.mulf %390, %400 : vector<8x32xf32>
    %402 = arith.addf %399, %401 : vector<8x32xf32>
    %403 = math.tanh %402 : vector<8x32xf32>
    %cst_72 = arith.constant 1.000000e+00 : f32
    %404 = vector.broadcast %cst_72 : f32 to vector<8x32xf32>
    %405 = arith.subf %404, %398 : vector<8x32xf32>
    %406 = arith.mulf %405, %403 : vector<8x32xf32>
    %407 = arith.mulf %398, %378 : vector<8x32xf32>
    %408 = arith.addf %406, %407 : vector<8x32xf32>
    %409 = vector.extract_strided_slice %257 {offsets = [40, 0], sizes = [8, 96], strides = [1, 1]} : vector<64x96xf32> to vector<8x96xf32>
    %cst_73 = arith.constant dense<0.000000e+00> : vector<8x96xf32>
    %410 = tpu.matmul %408, %252, %cst_73 {dimension_numbers = #tpu.dot_dimension_numbers<[1], [0], [0], [1], [0, 0, 1, 1], [], []>} : vector<8x32xf32>, vector<32x96xf32>, vector<8x96xf32> -> vector<8x96xf32>
    %411 = vector.broadcast %254 : vector<1x96xf32> to vector<8x96xf32>
    %412 = arith.addf %410, %411 : vector<8x96xf32>
    %413 = vector.extract_strided_slice %409 {offsets = [0, 0], sizes = [8, 32], strides = [1, 1]} : vector<8x96xf32> to vector<8x32xf32>
    %414 = vector.extract_strided_slice %412 {offsets = [0, 0], sizes = [8, 32], strides = [1, 1]} : vector<8x96xf32> to vector<8x32xf32>
    %415 = arith.addf %413, %414 : vector<8x32xf32>
    %416 = arith.negf %415 : vector<8x32xf32>
    %417 = math.exp %416 : vector<8x32xf32>
    %cst_74 = arith.constant 1.000000e+00 : f32
    %418 = vector.broadcast %cst_74 : f32 to vector<8x32xf32>
    %419 = arith.addf %418, %417 : vector<8x32xf32>
    %420 = arith.divf %418, %419 : vector<8x32xf32>
    %421 = vector.extract_strided_slice %409 {offsets = [0, 32], sizes = [8, 32], strides = [1, 1]} : vector<8x96xf32> to vector<8x32xf32>
    %422 = vector.extract_strided_slice %412 {offsets = [0, 32], sizes = [8, 32], strides = [1, 1]} : vector<8x96xf32> to vector<8x32xf32>
    %423 = arith.addf %421, %422 : vector<8x32xf32>
    %424 = arith.negf %423 : vector<8x32xf32>
    %425 = math.exp %424 : vector<8x32xf32>
    %cst_75 = arith.constant 1.000000e+00 : f32
    %426 = vector.broadcast %cst_75 : f32 to vector<8x32xf32>
    %427 = arith.addf %426, %425 : vector<8x32xf32>
    %428 = arith.divf %426, %427 : vector<8x32xf32>
    %429 = vector.extract_strided_slice %409 {offsets = [0, 64], sizes = [8, 32], strides = [1, 1]} : vector<8x96xf32> to vector<8x32xf32>
    %430 = vector.extract_strided_slice %412 {offsets = [0, 64], sizes = [8, 32], strides = [1, 1]} : vector<8x96xf32> to vector<8x32xf32>
    %431 = arith.mulf %420, %430 : vector<8x32xf32>
    %432 = arith.addf %429, %431 : vector<8x32xf32>
    %433 = math.tanh %432 : vector<8x32xf32>
    %cst_76 = arith.constant 1.000000e+00 : f32
    %434 = vector.broadcast %cst_76 : f32 to vector<8x32xf32>
    %435 = arith.subf %434, %428 : vector<8x32xf32>
    %436 = arith.mulf %435, %433 : vector<8x32xf32>
    %437 = arith.mulf %428, %408 : vector<8x32xf32>
    %438 = arith.addf %436, %437 : vector<8x32xf32>
    %439 = vector.extract_strided_slice %257 {offsets = [48, 0], sizes = [8, 96], strides = [1, 1]} : vector<64x96xf32> to vector<8x96xf32>
    %cst_77 = arith.constant dense<0.000000e+00> : vector<8x96xf32>
    %440 = tpu.matmul %438, %252, %cst_77 {dimension_numbers = #tpu.dot_dimension_numbers<[1], [0], [0], [1], [0, 0, 1, 1], [], []>} : vector<8x32xf32>, vector<32x96xf32>, vector<8x96xf32> -> vector<8x96xf32>
    %441 = vector.broadcast %254 : vector<1x96xf32> to vector<8x96xf32>
    %442 = arith.addf %440, %441 : vector<8x96xf32>
    %443 = vector.extract_strided_slice %439 {offsets = [0, 0], sizes = [8, 32], strides = [1, 1]} : vector<8x96xf32> to vector<8x32xf32>
    %444 = vector.extract_strided_slice %442 {offsets = [0, 0], sizes = [8, 32], strides = [1, 1]} : vector<8x96xf32> to vector<8x32xf32>
    %445 = arith.addf %443, %444 : vector<8x32xf32>
    %446 = arith.negf %445 : vector<8x32xf32>
    %447 = math.exp %446 : vector<8x32xf32>
    %cst_78 = arith.constant 1.000000e+00 : f32
    %448 = vector.broadcast %cst_78 : f32 to vector<8x32xf32>
    %449 = arith.addf %448, %447 : vector<8x32xf32>
    %450 = arith.divf %448, %449 : vector<8x32xf32>
    %451 = vector.extract_strided_slice %439 {offsets = [0, 32], sizes = [8, 32], strides = [1, 1]} : vector<8x96xf32> to vector<8x32xf32>
    %452 = vector.extract_strided_slice %442 {offsets = [0, 32], sizes = [8, 32], strides = [1, 1]} : vector<8x96xf32> to vector<8x32xf32>
    %453 = arith.addf %451, %452 : vector<8x32xf32>
    %454 = arith.negf %453 : vector<8x32xf32>
    %455 = math.exp %454 : vector<8x32xf32>
    %cst_79 = arith.constant 1.000000e+00 : f32
    %456 = vector.broadcast %cst_79 : f32 to vector<8x32xf32>
    %457 = arith.addf %456, %455 : vector<8x32xf32>
    %458 = arith.divf %456, %457 : vector<8x32xf32>
    %459 = vector.extract_strided_slice %439 {offsets = [0, 64], sizes = [8, 32], strides = [1, 1]} : vector<8x96xf32> to vector<8x32xf32>
    %460 = vector.extract_strided_slice %442 {offsets = [0, 64], sizes = [8, 32], strides = [1, 1]} : vector<8x96xf32> to vector<8x32xf32>
    %461 = arith.mulf %450, %460 : vector<8x32xf32>
    %462 = arith.addf %459, %461 : vector<8x32xf32>
    %463 = math.tanh %462 : vector<8x32xf32>
    %cst_80 = arith.constant 1.000000e+00 : f32
    %464 = vector.broadcast %cst_80 : f32 to vector<8x32xf32>
    %465 = arith.subf %464, %458 : vector<8x32xf32>
    %466 = arith.mulf %465, %463 : vector<8x32xf32>
    %467 = arith.mulf %458, %438 : vector<8x32xf32>
    %468 = arith.addf %466, %467 : vector<8x32xf32>
    %469 = vector.extract_strided_slice %257 {offsets = [56, 0], sizes = [8, 96], strides = [1, 1]} : vector<64x96xf32> to vector<8x96xf32>
    %cst_81 = arith.constant dense<0.000000e+00> : vector<8x96xf32>
    %470 = tpu.matmul %468, %252, %cst_81 {dimension_numbers = #tpu.dot_dimension_numbers<[1], [0], [0], [1], [0, 0, 1, 1], [], []>} : vector<8x32xf32>, vector<32x96xf32>, vector<8x96xf32> -> vector<8x96xf32>
    %471 = vector.broadcast %254 : vector<1x96xf32> to vector<8x96xf32>
    %472 = arith.addf %470, %471 : vector<8x96xf32>
    %473 = vector.extract_strided_slice %469 {offsets = [0, 0], sizes = [8, 32], strides = [1, 1]} : vector<8x96xf32> to vector<8x32xf32>
    %474 = vector.extract_strided_slice %472 {offsets = [0, 0], sizes = [8, 32], strides = [1, 1]} : vector<8x96xf32> to vector<8x32xf32>
    %475 = arith.addf %473, %474 : vector<8x32xf32>
    %476 = arith.negf %475 : vector<8x32xf32>
    %477 = math.exp %476 : vector<8x32xf32>
    %cst_82 = arith.constant 1.000000e+00 : f32
    %478 = vector.broadcast %cst_82 : f32 to vector<8x32xf32>
    %479 = arith.addf %478, %477 : vector<8x32xf32>
    %480 = arith.divf %478, %479 : vector<8x32xf32>
    %481 = vector.extract_strided_slice %469 {offsets = [0, 32], sizes = [8, 32], strides = [1, 1]} : vector<8x96xf32> to vector<8x32xf32>
    %482 = vector.extract_strided_slice %472 {offsets = [0, 32], sizes = [8, 32], strides = [1, 1]} : vector<8x96xf32> to vector<8x32xf32>
    %483 = arith.addf %481, %482 : vector<8x32xf32>
    %484 = arith.negf %483 : vector<8x32xf32>
    %485 = math.exp %484 : vector<8x32xf32>
    %cst_83 = arith.constant 1.000000e+00 : f32
    %486 = vector.broadcast %cst_83 : f32 to vector<8x32xf32>
    %487 = arith.addf %486, %485 : vector<8x32xf32>
    %488 = arith.divf %486, %487 : vector<8x32xf32>
    %489 = vector.extract_strided_slice %469 {offsets = [0, 64], sizes = [8, 32], strides = [1, 1]} : vector<8x96xf32> to vector<8x32xf32>
    %490 = vector.extract_strided_slice %472 {offsets = [0, 64], sizes = [8, 32], strides = [1, 1]} : vector<8x96xf32> to vector<8x32xf32>
    %491 = arith.mulf %480, %490 : vector<8x32xf32>
    %492 = arith.addf %489, %491 : vector<8x32xf32>
    %493 = math.tanh %492 : vector<8x32xf32>
    %cst_84 = arith.constant 1.000000e+00 : f32
    %494 = vector.broadcast %cst_84 : f32 to vector<8x32xf32>
    %495 = arith.subf %494, %488 : vector<8x32xf32>
    %496 = arith.mulf %495, %493 : vector<8x32xf32>
    %497 = arith.mulf %488, %468 : vector<8x32xf32>
    %498 = arith.addf %496, %497 : vector<8x32xf32>
    %c0_85 = arith.constant 0 : index
    %c0_86 = arith.constant 0 : index
    %499 = vector.load %arg9[%c0_85, %c0_86] : memref<32x8xf32, #tpu.memory_space<vmem>>, vector<32x8xf32>
    %cst_87 = arith.constant dense<0.000000e+00> : vector<8x8xf32>
    %500 = tpu.matmul %498, %499, %cst_87 {dimension_numbers = #tpu.dot_dimension_numbers<[1], [0], [0], [1], [0, 0, 1, 1], [], []>} : vector<8x32xf32>, vector<32x8xf32>, vector<8x8xf32> -> vector<8x8xf32>
    %c0_88 = arith.constant 0 : index
    %c0_89 = arith.constant 0 : index
    %501 = vector.load %arg10[%c0_88, %c0_89] : memref<1x8xf32, #tpu.memory_space<vmem>>, vector<1x8xf32>
    %502 = vector.broadcast %501 : vector<1x8xf32> to vector<8x8xf32>
    %503 = arith.addf %500, %502 : vector<8x8xf32>
    %c0_90 = arith.constant 0 : index
    %c0_91 = arith.constant 0 : index
    %504 = vector.load %arg11[%c0_90, %c0_91] : memref<8x8xf32, #tpu.memory_space<vmem>>, vector<8x8xf32>
    tpu.vector_store %arg11[%c0_90, %c0_91], %503 {strides = array<i32>} : memref<8x8xf32, #tpu.memory_space<vmem>>, vector<8x8xf32>,
    return
  }
}

</mosaic_0001>

<bundles_post_ra>
// kernel: basic_gru_forward.1
= control target key start
LH: loop header
LB: loop body
LE: loop exit
PB: predicated region body
PF: predicated region fallthrough
CT: control target
= control target key end

     0   :  { %v2553_v3 = vmov 0.0   ;;  %s3086_s0 = inlined_call_operand.vmem [shape: f32[8,8,32], index: 0, kind: input, shape index: {}]   ;;  %s3087_s1 = inlined_call_operand.vmem [shape: f32[32,96], index: 1, kind: input, shape index: {}]   ;;  %s3088_s2 = inlined_call_operand.vmem [shape: f32[32,96], index: 2, kind: input, shape index: {}]   ;;  %s3089_s3 = inlined_call_operand.vmem [shape: f32[1,96], index: 3, kind: input, shape index: {}]   ;;  %s3090_s4 = inlined_call_operand.vmem [shape: f32[1,96], index: 4, kind: input, shape index: {}]   ;;  %s3091_s5 = inlined_call_operand.vmem [shape: f32[32,96], index: 5, kind: input, shape index: {}]   ;;  %s3092_s6 = inlined_call_operand.vmem [shape: f32[32,96], index: 6, kind: input, shape index: {}]   ;;  %s3093_s7 = inlined_call_operand.vmem [shape: f32[1,96], index: 7, kind: input, shape index: {}]   ;;  %s3094_s8 = inlined_call_operand.vmem [shape: f32[1,96], index: 8, kind: input, shape index: {}]   ;;  %s3095_s9 = inlined_call_operand.vmem [shape: f32[32,8], index: 9, kind: input, shape index: {}]   ;;  %s3096_s10 = inlined_call_operand.vmem [shape: f32[1,8], index: 10, kind: input, shape index: {}]   ;;  %s3097_s11 = inlined_call_operand.hbm [shape: f32[8,8], index: 11, kind: output, shape index: {}]  }
   0x1   :  { %v50_v0 = vld [vmem:[%s3087_s1 + $0x18] sm:$0xff]  ;;  %v49_v2 = vld [vmem:[%s3087_s1 + $0x10] sm:$0xff]  ;;  %2223 = vmatprep.subr.mxu1 %v2553_v3  ;;  %v48_v5 = vld [vmem:[%s3087_s1 + $0x8] sm:$0xff] }
   0x2   :  { %v2624_v1 = vld [vmem:[%s3088_s2 + $0x18] sm:$0xff]  ;;  %2203 = vmatprep.subr.mxu0 %v50_v0  ;;  %v2633_v4 = vld [vmem:[%s3088_s2 + $0x10] sm:$0xff]  ;;  %v2643_v6 = vld [vmem:[%s3088_s2 + $0x8] sm:$0xff] }
   0x3   :  { %2204 = vmatpush3.msra.mxu0 %v50_v0  ;;  %2224 = vmatpush3.msra.mxu1 %v2624_v1 }
   0x4   :  { %2205 = vmatprep.subr.mxu0 %v49_v2  ;;  %2225 = vmatprep.subr.mxu1 %v2553_v3 }
   0x5   :  { %16 = vsyncpa [#allocation3], 0  ;;  %2206 = vmatpush3.msra.mxu0 %v49_v2  ;;  %2226 = vmatpush3.msra.mxu1 %v2633_v4  ;;  %v47_v7 = vld [vmem:[%s3087_s1] sm:$0xff]  ;;  %vm63_vm0 = vcmask 261120   ;;  %v40_v10 = vld [vmem:[%s3086_s0 + $0x8] sm:$0xff]  ;;  %vm2554_vm1 = vmmov 0  }
   0x6   :  { %2207 = vmatprep.subr.mxu0 %v48_v5  ;;  %2227 = vmatprep.subr.mxu1 %v2553_v3  ;;  %v39_v8 = vld [vmem:[%s3086_s0] sm:$0xff]  ;;  %s2555_s18 = smov 64   ;;  %v41_v48 = vld [vmem:[%s3086_s0 + $0x10] sm:$0xff]  ;;  %v42_v49 = vld [vmem:[%s3086_s0 + $0x18] sm:$0xff]  ;;  %vm2026_vm2 = vcmask 64512  }
   0x7   :  { %2208 = vmatpush3.msra.mxu0 %v48_v5  ;;  %2228 = vmatpush3.msra.mxu1 %v2643_v6  ;;  %v2657_v9 = vld [vmem:[%s3088_s2] sm:$0xff]  ;;  %v44_v51 = vld [vmem:[%s3086_s0 + $0x28] sm:$0xff]  ;;  %v45_v52 = vld [vmem:[%s3086_s0 + $0x30] sm:$0xff] }
   0x8   :  { %2209 = vmatprep.subr.mxu0 %v47_v7  ;;  %2229 = vmatprep.subr.mxu1 %v2553_v3  ;;  %v2692_v11 = vld [vmem:[%s3090_s4] ss:$0 sm:$0xff]  ;;  %v46_v53 = vld [vmem:[%s3086_s0 + $0x38] sm:$0xff] }
   0x9   :  { %2210 = vmatpush3.msra.mxu0 %v47_v7  ;;  %2211 = vmatprep.mubr.msk.f32.mxu0 %vm63_vm0, %v39_v8  ;;  %v2699_v16 = vld [vmem:[%s3089_s3] ss:$0 sm:$0xff]  ;;  %s2556_s3 = smov 96  }
   0xa   :  { %2230 = vmatpush3.msra.mxu1 %v2657_v9  ;;  %2231 = vmatprep.mubr.msk.f32.mxu1 %vm2554_vm1, %v2553_v3  ;;  %v43_v50 = vld [vmem:[%s3086_s0 + $0x20] sm:$0xff] }
   0xb   :  { %2212 = vmatmul.mubr.msk.f32.vlgmr.msra.gmra.mxu0 %vm63_vm0, %v40_v10  ;;  %2232 = vmatmul.mubr.f32.vlgmr.msra.gmra.mxu1 %v2553_v3 }
   0xc   :  { %2234 = vmatprep.subr.mxu1 %v2553_v3  ;;  %2242 = vmatprep.mubr.msk.f32.mxu1 %vm2554_vm1, %v2553_v3 }
   0xd   :  { %2235 = vmatpush3.msra.mxu1 %v2624_v1  ;;  %2245 = vmatprep.subr.mxu0 %v2553_v3 }
   0xe   :  { %2236 = vmatprep.subr.mxu1 %v2553_v3  ;;  %2246 = vmatpush3.msra.mxu0 %v2624_v1 }
   0xf   :  { %2237 = vmatpush3.msra.mxu1 %v2633_v4  ;;  %2247 = vmatprep.subr.mxu0 %v2553_v3 }
  0x10   :  { %2238 = vmatprep.subr.mxu1 %v2553_v3  ;;  %2248 = vmatpush3.msra.mxu0 %v2633_v4 }
  0x11   :  { %2239 = vmatpush3.msra.mxu1 %v2643_v6  ;;  %2249 = vmatprep.subr.mxu0 %v2553_v3 }
  0x12   :  { %2240 = vmatprep.subr.mxu1 %v2553_v3  ;;  %2250 = vmatpush3.msra.mxu0 %v2643_v6 }
  0x13   :  { %2241 = vmatpush3.msra.mxu1 %v2657_v9  ;;  %2251 = vmatprep.subr.mxu0 %v2553_v3 }
  0x14   :  { %2252 = vmatpush3.msra.mxu0 %v2657_v9  ;;  %2256 = vmatprep.subr.mxu1 %v2553_v3 }
  0x15   :  { %2267 = vmatprep.subr.mxu0 %v2553_v3  ;;  %2214 = vmatprep.mubr.msk.f32.mxu0 %vm63_vm0, %v41_v48 }
  0x16   :  { %2215 = vmatmul.mubr.msk.f32.gmra.mxu0 %vm63_vm0, %v42_v49 }
  0x17   :  { %2217 = vmatprep.mubr.msk.f32.mxu0 %vm63_vm0, %v43_v50 }
  0x1a   :  { %2218 = vmatmul.mubr.msk.f32.gmra.mxu0 %vm63_vm0, %v44_v51 }
  0x1b   :  { %2220 = vmatprep.mubr.msk.f32.mxu0 %vm63_vm0, %v45_v52 }
  0x1e   :  { %2221 = vmatmul.mubr.msk.f32.gmra.mxu0 %vm63_vm0, %v46_v53 }
  0x1f   :  { %2253 = vmatprep.mubr.msk.f32.mxu0 %vm2554_vm1, %v2553_v3 }
  0xcb   :  { %v268_v12 = vpop.f32.mrf.mxu1  ;;  %v2213_v15 = vpop.f32.mrf.mxu0 }
  0xcc   :  { %v269_v13 = vadd.f32 %v2692_v11, %v268_v12  ;;  %v160_v38 = vadd.f32 %v2213_v15, %v2699_v16 }
  0xcd   :  { %v2233_v14 = vpop.f32.mrf.mxu1  ;;  %v154_v17 = vpop.f32.mrf.mxu0 }
  0xce   :  { %280 = vrot.lane.b32.xlu0 %v269_v13, %s2555_s18  ;;  %v155_v18 = vadd.f32 %v2699_v16, %v154_v17 }
  0xd0   :  { %v272_v19 = vadd.f32 %v269_v13, %v155_v18 }
  0xd2   :  { %v2052_v20 = vmul.f32 -1.442695, %v272_v19 }
  0xd4   :  { %2435 = vpow2.f32 %v2052_v20 }
  0xd6   :  { %v2216_v61 = vpop.f32.mrf.mxu0 }
  0xd8   :  { %v164_v62 = vpop.f32.mrf.mxu0 }
  0xd9   :  { %v165_v12 = vadd.f32 %v2699_v16, %v164_v62 }
  0xda   :  { %v2765_v63 = vpop.f32.mrf.mxu0 }
  0xdc   :  { %v2767_v0 = vpop.f32.mrf.mxu0 }
  0xde   :  { %v2769_v2 = vpop.f32.mrf.mxu0 }
  0xe0   :  { %v2771_v5 = vpop.f32.mrf.mxu0 }
  0xe1   :  { %v2436_v21 = vpop.eup %2435 }
  0xe2   :  { %v276_v22 = vadd.f32 1.0, %v2436_v21 }
  0xe4   :  { %2437 = vrcp.f32 %v276_v22 }
  0xf1   :  { %v2438_v23 = vpop.eup %2437 }
  0xf2   :  { %v290_v29 = vsub.f32 1.0, %v2438_v23  ;;  %v296_v31 = vmul.f32 0.0, %v2438_v23 }
 0x140   :  { %v281_v24 = vpop.permute.xlu0 %280 }
 0x141   :  { %v283_v25 = vmul.f32 %v2438_v23, %v281_v24 }
 0x143   :  { %285 = vrot.lane.b32.xlu0 %v283_v25, %s2555_s18 }
 0x1b5   :  { %v286_v26 = vpop.permute.xlu0 %285 }
 0x1b6   :  { %v288_v27 = vadd.f32 %v286_v26, %v155_v18 }
 0x1b8   :  { %2439 = vtanh.f32 %v288_v27 }
 0x1c5   :  { %v2440_v28 = vpop.eup %2439 }
 0x1c6   :  { %292 = vrot.lane.b32.xlu1 %v2440_v28, %s2556_s3 }
 0x238   :  { %v293_v30 = vpop.permute.xlu1 %292 }
 0x239   :  { %v295_v32 = vmul.f32 %v293_v30, %v290_v29 }
 0x23b   :  { %v297_v33 = vadd.f32 %v296_v31, %v295_v32 }
 0x23d   :  { %299 = vrot.lane.b32.xlu1 %v297_v33, %s2556_s3 }
 0x2af   :  { %v2705_v34 = vpop.permute.xlu1 %299 }
 0x2b0   :  { %2243 = vmatmul.mubr.msk.f32.vlgmr.msra.gmra.mxu1 %vm63_vm0, %v2705_v34 }
 0x2b1   :  { %2257 = vmatpush3.msra.mxu1 %v2624_v1  ;;  %2264 = vmatprep.mubr.msk.f32.mxu1 %vm2554_vm1, %v2553_v3 }
 0x2b2   :  { %2258 = vmatprep.subr.mxu1 %v2553_v3 }
 0x2b3   :  { %2259 = vmatpush3.msra.mxu1 %v2633_v4 }
 0x2b4   :  { %2260 = vmatprep.subr.mxu1 %v2553_v3 }
 0x2b5   :  { %2261 = vmatpush3.msra.mxu1 %v2643_v6 }
 0x2b6   :  { %2262 = vmatprep.subr.mxu1 %v2553_v3 }
 0x2b7   :  { %2263 = vmatpush3.msra.mxu1 %v2657_v9 }
 0x2b8   :  { %2278 = vmatprep.subr.mxu1 %v2553_v3 }
 0x370   :  { %v369_v35 = vpop.f32.mrf.mxu1 }
 0x371   :  { %v370_v36 = vadd.f32 %v2692_v11, %v369_v35 }
 0x372   :  { %v2244_v37 = vpop.f32.mrf.mxu1 }
 0x373   :  { %381 = vrot.lane.b32.xlu0 %v370_v36, %s2555_s18  ;;  %v373_v39 = vadd.f32 %v370_v36, %v160_v38 }
 0x375   :  { %v2054_v40 = vmul.f32 -1.442695, %v373_v39 }
 0x377   :  { %2441 = vpow2.f32 %v2054_v40 }
 0x384   :  { %v2442_v41 = vpop.eup %2441 }
 0x385   :  { %v377_v42 = vadd.f32 1.0, %v2442_v41 }
 0x387   :  { %2443 = vrcp.f32 %v377_v42 }
 0x394   :  { %v2444_v43 = vpop.eup %2443 }
 0x395   :  { %v391_v55 = vsub.f32 1.0, %v2444_v43  ;;  %v397_v57 = vmul.f32 %v2444_v43, %v297_v33  ;;  %v170_v33 = vadd.f32 %v2216_v61, %v2699_v16 }
 0x3e5   :  { %v382_v44 = vpop.permute.xlu0 %381 }
 0x3e6   :  { %v384_v45 = vmul.f32 %v2444_v43, %v382_v44 }
 0x3e8   :  { %386 = vrot.lane.b32.xlu1 %v384_v45, %s2555_s18 }
 0x45a   :  { %v387_v46 = vpop.permute.xlu1 %386 }
 0x45b   :  { %v389_v47 = vadd.f32 %v387_v46, %v160_v38 }
 0x45d   :  { %2445 = vtanh.f32 %v389_v47 }
 0x46a   :  { %v2446_v54 = vpop.eup %2445 }
 0x46b   :  { %393 = vrot.lane.b32.xlu0 %v2446_v54, %s2556_s3  ;;  %v175_v54 = vadd.f32 %v2699_v16, %v2767_v0 }
 0x4dd   :  { %v394_v56 = vpop.permute.xlu0 %393 }
 0x4de   :  { %v396_v58 = vmul.f32 %v394_v56, %v391_v55 }
 0x4e0   :  { %v398_v59 = vadd.f32 %v397_v57, %v396_v58 }
 0x4e2   :  { %400 = vrot.lane.b32.xlu1 %v398_v59, %s2556_s3 }
 0x554   :  { %v2751_v60 = vpop.permute.xlu1 %400 }
 0x555   :  { %2254 = vmatmul.mubr.msk.f32.vlgmr.msra.gmra.mxu0 %vm63_vm0, %v2751_v60 }
 0x556   :  { %2268 = vmatpush3.msra.mxu0 %v2624_v1  ;;  %2275 = vmatprep.mubr.msk.f32.mxu0 %vm2554_vm1, %v2553_v3 }
 0x557   :  { %2269 = vmatprep.subr.mxu0 %v2553_v3 }
 0x558   :  { %2270 = vmatpush3.msra.mxu0 %v2633_v4 }
 0x559   :  { %2271 = vmatprep.subr.mxu0 %v2553_v3 }
 0x55a   :  { %2272 = vmatpush3.msra.mxu0 %v2643_v6 }
 0x55b   :  { %2273 = vmatprep.subr.mxu0 %v2553_v3 }
 0x55c   :  { %2274 = vmatpush3.msra.mxu0 %v2657_v9 }
 0x55d   :  { %2289 = vmatprep.subr.mxu0 %v2553_v3 }
 0x615   :  { %v470_v7 = vpop.f32.mrf.mxu0 }
 0x616   :  { %v471_v8 = vadd.f32 %v2692_v11, %v470_v7 }
 0x617   :  { %v2255_v10 = vpop.f32.mrf.mxu0 }
 0x618   :  { %482 = vrot.lane.b32.xlu0 %v471_v8, %s2555_s18  ;;  %v474_v13 = vadd.f32 %v471_v8, %v165_v12 }
 0x61a   :  { %v2056_v14 = vmul.f32 -1.442695, %v474_v13 }
 0x61c   :  { %2447 = vpow2.f32 %v2056_v14 }
 0x629   :  { %v2448_v15 = vpop.eup %2447 }
 0x62a   :  { %v478_v17 = vadd.f32 1.0, %v2448_v15 }
 0x62c   :  { %2449 = vrcp.f32 %v478_v17 }
 0x639   :  { %v2450_v18 = vpop.eup %2449 }
 0x63a   :  { %v492_v24 = vsub.f32 1.0, %v2450_v18  ;;  %v498_v26 = vmul.f32 %v2450_v18, %v398_v59 }
 0x68a   :  { %v483_v19 = vpop.permute.xlu0 %482 }
 0x68b   :  { %v485_v20 = vmul.f32 %v2450_v18, %v483_v19 }
 0x68d   :  { %487 = vrot.lane.b32.xlu1 %v485_v20, %s2555_s18  ;;  %v180_v20 = vadd.f32 %v2765_v63, %v2699_v16 }
 0x6ff   :  { %v488_v21 = vpop.permute.xlu1 %487 }
 0x700   :  { %v490_v22 = vadd.f32 %v488_v21, %v165_v12 }
 0x702   :  { %2451 = vtanh.f32 %v490_v22 }
 0x70f   :  { %v2452_v23 = vpop.eup %2451 }
 0x710   :  { %494 = vrot.lane.b32.xlu0 %v2452_v23, %s2556_s3 }
 0x782   :  { %v495_v25 = vpop.permute.xlu0 %494 }
 0x783   :  { %v497_v27 = vmul.f32 %v495_v25, %v492_v24 }
 0x785   :  { %v499_v28 = vadd.f32 %v498_v26, %v497_v27  ;;  %v1008_v27 = vld [vmem:[%s3091_s5 + $0x18] sm:$0xff] }
 0x787   :  { %501 = vrot.lane.b32.xlu1 %v499_v28, %s2556_s3 }
 0x7f9   :  { %v2779_v29 = vpop.permute.xlu1 %501 }
 0x7fa   :  { %2265 = vmatmul.mubr.msk.f32.vlgmr.msra.gmra.mxu1 %vm63_vm0, %v2779_v29 }
 0x7fb   :  { %2279 = vmatpush3.msra.mxu1 %v2624_v1  ;;  %2286 = vmatprep.mubr.msk.f32.mxu1 %vm2554_vm1, %v2553_v3 }
 0x7fc   :  { %2280 = vmatprep.subr.mxu1 %v2553_v3 }
 0x7fd   :  { %2281 = vmatpush3.msra.mxu1 %v2633_v4 }
 0x7fe   :  { %2282 = vmatprep.subr.mxu1 %v2553_v3 }
 0x7ff   :  { %2283 = vmatpush3.msra.mxu1 %v2643_v6 }
 0x800   :  { %2284 = vmatprep.subr.mxu1 %v2553_v3 }
 0x801   :  { %2285 = vmatpush3.msra.mxu1 %v2657_v9 }
 0x802   :  { %2300 = vmatprep.subr.mxu1 %v2553_v3 }
 0x8ba   :  { %v571_v30 = vpop.f32.mrf.mxu1 }
 0x8bb   :  { %v572_v31 = vadd.f32 %v2692_v11, %v571_v30 }
 0x8bc   :  { %v2266_v32 = vpop.f32.mrf.mxu1 }
 0x8bd   :  { %583 = vrot.lane.b32.xlu0 %v572_v31, %s2555_s18  ;;  %v575_v35 = vadd.f32 %v572_v31, %v170_v33 }
 0x8bf   :  { %v2058_v36 = vmul.f32 -1.442695, %v575_v35 }
 0x8c1   :  { %2453 = vpow2.f32 %v2058_v36  ;;  %v1007_v36 = vld [vmem:[%s3091_s5 + $0x10] sm:$0xff] }
 0x8ce   :  { %v2454_v37 = vpop.eup %2453 }
 0x8cf   :  { %v579_v38 = vadd.f32 1.0, %v2454_v37  ;;  %v1006_v37 = vld [vmem:[%s3091_s5 + $0x8] sm:$0xff] }
 0x8d1   :  { %2455 = vrcp.f32 %v579_v38  ;;  %v1005_v38 = vld [vmem:[%s3091_s5] sm:$0xff] }
 0x8de   :  { %v2456_v39 = vpop.eup %2455 }
 0x8df   :  { %v593_v45 = vsub.f32 1.0, %v2456_v39  ;;  %v599_v47 = vmul.f32 %v2456_v39, %v499_v28 }
 0x92f   :  { %v584_v40 = vpop.permute.xlu0 %583 }
 0x930   :  { %v586_v41 = vmul.f32 %v2456_v39, %v584_v40 }
 0x932   :  { %588 = vrot.lane.b32.xlu1 %v586_v41, %s2555_s18 }
 0x9a4   :  { %v589_v42 = vpop.permute.xlu1 %588 }
 0x9a5   :  { %v591_v43 = vadd.f32 %v589_v42, %v170_v33 }
 0x9a7   :  { %2457 = vtanh.f32 %v591_v43 }
 0x9b4   :  { %v2458_v44 = vpop.eup %2457 }
 0x9b5   :  { %595 = vrot.lane.b32.xlu0 %v2458_v44, %s2556_s3 }
 0xa27   :  { %v596_v46 = vpop.permute.xlu0 %595 }
 0xa28   :  { %v598_v48 = vmul.f32 %v596_v46, %v593_v45 }
 0xa2a   :  { %v600_v49 = vadd.f32 %v599_v47, %v598_v48 }
 0xa2c   :  { %602 = vrot.lane.b32.xlu1 %v600_v49, %s2556_s3 }
 0xa9e   :  { %v2799_v50 = vpop.permute.xlu1 %602 }
 0xa9f   :  { %2276 = vmatmul.mubr.msk.f32.vlgmr.msra.gmra.mxu0 %vm63_vm0, %v2799_v50 }
 0xaa0   :  { %2290 = vmatpush3.msra.mxu0 %v2624_v1  ;;  %2297 = vmatprep.mubr.msk.f32.mxu0 %vm2554_vm1, %v2553_v3 }
 0xaa1   :  { %2291 = vmatprep.subr.mxu0 %v2553_v3 }
 0xaa2   :  { %2292 = vmatpush3.msra.mxu0 %v2633_v4 }
 0xaa3   :  { %2293 = vmatprep.subr.mxu0 %v2553_v3 }
 0xaa4   :  { %2294 = vmatpush3.msra.mxu0 %v2643_v6 }
 0xaa5   :  { %2295 = vmatprep.subr.mxu0 %v2553_v3 }
 0xaa6   :  { %2296 = vmatpush3.msra.mxu0 %v2657_v9 }
 0xaa7   :  { %2311 = vmatprep.subr.mxu0 %v1008_v27 }
 0xb5f   :  { %v672_v51 = vpop.f32.mrf.mxu0 }
 0xb60   :  { %v673_v52 = vadd.f32 %v2692_v11, %v672_v51  ;;  %v2883_v51 = vld [vmem:[%s3092_s6 + $0x8] sm:$0xff] }
 0xb61   :  { %v2277_v53 = vpop.f32.mrf.mxu0 }
 0xb62   :  { %684 = vrot.lane.b32.xlu0 %v673_v52, %s2555_s18  ;;  %v676_v55 = vadd.f32 %v673_v52, %v175_v54  ;;  %v2890_v52 = vld [vmem:[%s3092_s6] sm:$0xff] }
 0xb64   :  { %v2060_v56 = vmul.f32 -1.442695, %v676_v55 }
 0xb66   :  { %2459 = vpow2.f32 %v2060_v56 }
 0xb73   :  { %v2460_v57 = vpop.eup %2459 }
 0xb74   :  { %v680_v58 = vadd.f32 1.0, %v2460_v57 }
 0xb76   :  { %2461 = vrcp.f32 %v680_v58 }
 0xb83   :  { %v2462_v59 = vpop.eup %2461 }
 0xb84   :  { %v694_v12 = vsub.f32 1.0, %v2462_v59  ;;  %v700_v0 = vmul.f32 %v2462_v59, %v600_v49 }
 0xbd4   :  { %v685_v61 = vpop.permute.xlu0 %684 }
 0xbd5   :  { %v687_v62 = vmul.f32 %v2462_v59, %v685_v61 }
 0xbd7   :  { %689 = vrot.lane.b32.xlu1 %v687_v62, %s2555_s18  ;;  %v2925_v62 = vld [vmem:[%s3094_s8] ss:$0 sm:$0xff] }
 0xc49   :  { %v690_v7 = vpop.permute.xlu1 %689 }
 0xc4a   :  { %v692_v8 = vadd.f32 %v690_v7, %v175_v54 }
 0xc4c   :  { %2463 = vtanh.f32 %v692_v8 }
 0xc59   :  { %v2464_v10 = vpop.eup %2463 }
 0xc5a   :  { %696 = vrot.lane.b32.xlu0 %v2464_v10, %s2556_s3 }
 0xccc   :  { %v697_v13 = vpop.permute.xlu0 %696 }
 0xccd   :  { %v699_v14 = vmul.f32 %v697_v13, %v694_v12 }
 0xccf   :  { %v701_v15 = vadd.f32 %v700_v0, %v699_v14  ;;  %v2934_v0 = vld [vmem:[%s3093_s7] ss:$0 sm:$0xff] }
 0xcd1   :  { %703 = vrot.lane.b32.xlu1 %v701_v15, %s2556_s3 }
 0xd43   :  { %v704_v17 = vpop.permute.xlu1 %703 }
 0xd44   :  { %2287 = vmatmul.mubr.msk.f32.vlgmr.msra.gmra.mxu1 %vm63_vm0, %v704_v17 }
 0xd45   :  { %2301 = vmatpush3.msra.mxu1 %v2624_v1  ;;  %2308 = vmatprep.mubr.msk.f32.mxu1 %vm2554_vm1, %v2553_v3 }
 0xd46   :  { %2302 = vmatprep.subr.mxu1 %v2553_v3 }
 0xd47   :  { %2303 = vmatpush3.msra.mxu1 %v2633_v4 }
 0xd48   :  { %2304 = vmatprep.subr.mxu1 %v2553_v3 }
 0xd49   :  { %2305 = vmatpush3.msra.mxu1 %v2643_v6 }
 0xd4a   :  { %2306 = vmatprep.subr.mxu1 %v2553_v3 }
 0xd4b   :  { %2307 = vmatpush3.msra.mxu1 %v2657_v9 }
 0xd4c   :  { %2331 = vmatprep.subr.mxu1 %v2553_v3 }
 0xe04   :  { %v773_v18 = vpop.f32.mrf.mxu1 }
 0xe05   :  { %v774_v1 = vadd.f32 %v2692_v11, %v773_v18 }
 0xe06   :  { %v2288_v19 = vpop.f32.mrf.mxu1 }
 0xe07   :  { %785 = vrot.lane.b32.xlu0 %v774_v1, %s2555_s18  ;;  %v777_v4 = vadd.f32 %v774_v1, %v180_v20 }
 0xe09   :  { %v2062_v21 = vmul.f32 -1.442695, %v777_v4 }
 0xe0b   :  { %2465 = vpow2.f32 %v2062_v21 }
 0xe18   :  { %v2466_v22 = vpop.eup %2465 }
 0xe19   :  { %v781_v6 = vadd.f32 1.0, %v2466_v22 }
 0xe1b   :  { %2467 = vrcp.f32 %v781_v6 }
 0xe28   :  { %v2468_v23 = vpop.eup %2467 }
 0xe29   :  { %v795_v28 = vsub.f32 1.0, %v2468_v23  ;;  %v801_v31 = vmul.f32 %v2468_v23, %v701_v15 }
 0xe79   :  { %v786_v24 = vpop.permute.xlu0 %785 }
 0xe7a   :  { %v788_v9 = vmul.f32 %v2468_v23, %v786_v24  ;;  %v190_v24 = vadd.f32 %v2769_v2, %v2699_v16 }
 0xe7c   :  { %790 = vrot.lane.b32.xlu1 %v788_v9, %s2555_s18 }
 0xeee   :  { %v791_v25 = vpop.permute.xlu1 %790 }
 0xeef   :  { %v793_v26 = vadd.f32 %v791_v25, %v180_v20 }
 0xef1   :  { %2469 = vtanh.f32 %v793_v26 }
 0xefe   :  { %v2470_v63 = vpop.eup %2469 }
 0xeff   :  { %797 = vrot.lane.b32.xlu0 %v2470_v63, %s2556_s3 }
 0xf71   :  { %v798_v30 = vpop.permute.xlu0 %797 }
 0xf72   :  { %v800_v32 = vmul.f32 %v798_v30, %v795_v28 }
 0xf74   :  { %v802_v33 = vadd.f32 %v801_v31, %v800_v32 }
 0xf76   :  { %804 = vrot.lane.b32.xlu1 %v802_v33, %s2556_s3 }
 0xfe8   :  { %v805_v35 = vpop.permute.xlu1 %804 }
 0xfe9   :  { %2298 = vmatmul.mubr.msk.f32.vlgmr.msra.gmra.mxu0 %vm63_vm0, %v805_v35 }
 0xfea   :  { %2312 = vmatpush3.msra.mxu0 %v1008_v27  ;;  %2319 = vmatprep.mubr.msk.f32.mxu0 %vm63_vm0, %v2705_v34 }
 0xfeb   :  { %2313 = vmatprep.subr.mxu0 %v1007_v36 }
 0xfec   :  { %2314 = vmatpush3.msra.mxu0 %v1007_v36 }
 0xfed   :  { %2315 = vmatprep.subr.mxu0 %v1006_v37 }
 0xfee   :  { %2316 = vmatpush3.msra.mxu0 %v1006_v37 }
 0xfef   :  { %2317 = vmatprep.subr.mxu0 %v1005_v38 }
 0xff0   :  { %2318 = vmatpush3.msra.mxu0 %v1005_v38 }
 0xff1   :  { %2320 = vmatmul.mubr.msk.f32.vlgmr.msra.gmra.mxu0 %vm63_vm0, %v2751_v60  ;;  %2353 = vmatprep.subr.mxu0 %v2553_v3  ;;  %v185_v60 = vadd.f32 %v2699_v16, %v2771_v5  ;;  %v2870_v5 = vld [vmem:[%s3092_s6 + $0x18] sm:$0xff] }
 0xff2   :  { %2322 = vmatprep.mubr.msk.f32.mxu0 %vm63_vm0, %v2779_v29  ;;  %2354 = vmatpush3.msra.mxu0 %v2870_v5 }
 0xff3   :  { %2355 = vmatprep.subr.mxu0 %v2553_v3 }
 0xff5   :  { %2323 = vmatmul.mubr.msk.f32.gmra.mxu0 %vm63_vm0, %v2799_v50  ;;  %v2876_v50 = vld [vmem:[%s3092_s6 + $0x10] sm:$0xff] }
 0xff6   :  { %2325 = vmatprep.mubr.msk.f32.mxu0 %vm63_vm0, %v704_v17  ;;  %2356 = vmatpush3.msra.mxu0 %v2876_v50 }
 0xff7   :  { %2357 = vmatprep.subr.mxu0 %v2553_v3 }
 0xff8   :  { %2358 = vmatpush3.msra.mxu0 %v2883_v51 }
 0xff9   :  { %2326 = vmatmul.mubr.msk.f32.gmra.mxu0 %vm63_vm0, %v805_v35  ;;  %2359 = vmatprep.subr.mxu0 %v2553_v3 }
 0xffa   :  { %2360 = vmatpush3.msra.mxu0 %v2890_v52 }
 0xffb   :  { %2375 = vmatprep.subr.mxu0 %v2553_v3 }
0x10a9   :  { %v874_v34 = vpop.f32.mrf.mxu0 }
0x10aa   :  { %v875_v39 = vadd.f32 %v2692_v11, %v874_v34 }
0x10ab   :  { %v2299_v40 = vpop.f32.mrf.mxu0 }
0x10ac   :  { %886 = vrot.lane.b32.xlu0 %v875_v39, %s2555_s18  ;;  %v878_v41 = vadd.f32 %v875_v39, %v185_v60 }
0x10ae   :  { %v2064_v42 = vmul.f32 -1.442695, %v878_v41 }
0x10b0   :  { %2471 = vpow2.f32 %v2064_v42 }
0x10b1   :  { %v2929_v12 = vpop.f32.mrf.mxu0 }
0x10b3   :  { %v1092_v13 = vpop.f32.mrf.mxu0 }
0x10b4   :  { %v1093_v14 = vadd.f32 %v2934_v0, %v1092_v13 }
0x10bd   :  { %v2472_v29 = vpop.eup %2471 }
0x10be   :  { %v882_v43 = vadd.f32 1.0, %v2472_v29 }
0x10c0   :  { %2473 = vrcp.f32 %v882_v43 }
0x10cd   :  { %v2474_v44 = vpop.eup %2473 }
0x10ce   :  { %v896_v53 = vsub.f32 1.0, %v2474_v44  ;;  %v902_v55 = vmul.f32 %v2474_v44, %v802_v33 }
0x111e   :  { %v887_v45 = vpop.permute.xlu0 %886 }
0x111f   :  { %v889_v46 = vmul.f32 %v2474_v44, %v887_v45  ;;  %v1098_v44 = vadd.f32 %v2929_v12, %v2934_v0  ;;  %v2324_v12 = vpop.f32.mrf.mxu0 }
0x1121   :  { %891 = vrot.lane.b32.xlu1 %v889_v46, %s2555_s18  ;;  %v1102_v13 = vpop.f32.mrf.mxu0 }
0x1193   :  { %v892_v47 = vpop.permute.xlu1 %891 }
0x1194   :  { %v894_v48 = vadd.f32 %v892_v47, %v185_v60 }
0x1196   :  { %2475 = vtanh.f32 %v894_v48 }
0x11a3   :  { %v2476_v49 = vpop.eup %2475 }
0x11a4   :  { %898 = vrot.lane.b32.xlu0 %v2476_v49, %s2556_s3 }
0x1216   :  { %v899_v54 = vpop.permute.xlu0 %898 }
0x1217   :  { %v901_v56 = vmul.f32 %v899_v54, %v896_v53 }
0x1219   :  { %v2895_v57 = vadd.f32 %v902_v55, %v901_v56 }
0x121b   :  { %905 = vrot.lane.b32.xlu1 %v2895_v57, %s2556_s3 }
0x128d   :  { %v906_v58 = vpop.permute.xlu1 %905 }
0x128e   :  { %2309 = vmatmul.mubr.msk.f32.vlgmr.msra.gmra.mxu1 %vm63_vm0, %v906_v58  ;;  %2328 = vmatprep.mubr.msk.f32.mxu0 %vm63_vm0, %v906_v58 }
0x128f   :  { %2332 = vmatpush3.msra.mxu1 %v2870_v5  ;;  %2339 = vmatprep.mubr.msk.f32.mxu1 %vm2554_vm1, %v2553_v3 }
0x1290   :  { %2333 = vmatprep.subr.mxu1 %v2553_v3 }
0x1291   :  { %2334 = vmatpush3.msra.mxu1 %v2876_v50 }
0x1292   :  { %2335 = vmatprep.subr.mxu1 %v2553_v3 }
0x1293   :  { %2336 = vmatpush3.msra.mxu1 %v2883_v51 }
0x1294   :  { %2337 = vmatprep.subr.mxu1 %v2553_v3 }
0x1295   :  { %2338 = vmatpush3.msra.mxu1 %v2890_v52 }
0x1296   :  { %2340 = vmatmul.mubr.f32.vlgmr.msra.gmra.mxu1 %v2553_v3  ;;  %2342 = vmatprep.subr.mxu1 %v2553_v3 }
0x1297   :  { %2343 = vmatpush3.msra.mxu1 %v2870_v5  ;;  %2350 = vmatprep.mubr.msk.f32.mxu1 %vm2554_vm1, %v2553_v3 }
0x1298   :  { %2344 = vmatprep.subr.mxu1 %v2553_v3 }
0x1299   :  { %2345 = vmatpush3.msra.mxu1 %v2876_v50 }
0x129a   :  { %2346 = vmatprep.subr.mxu1 %v2553_v3 }
0x129b   :  { %2347 = vmatpush3.msra.mxu1 %v2883_v51 }
0x129c   :  { %2348 = vmatprep.subr.mxu1 %v2553_v3 }
0x129d   :  { %2349 = vmatpush3.msra.mxu1 %v2890_v52 }
0x129e   :  { %2364 = vmatprep.subr.mxu1 %v2553_v3 }
0x134e   :  { %v975_v59 = vpop.f32.mrf.mxu1 }
0x134f   :  { %v976_v23 = vadd.f32 %v2692_v11, %v975_v59 }
0x1350   :  { %v2310_v61 = vpop.f32.mrf.mxu1 }
0x1351   :  { %v979_v9 = vadd.f32 %v976_v23, %v190_v24 }
0x1353   :  { %v2066_v25 = vmul.f32 -1.442695, %v979_v9 }
0x1356   :  { %v1203_v7 = vpop.f32.mrf.mxu1 }
0x1357   :  { %v1204_v8 = vadd.f32 %v2925_v62, %v1203_v7 }
0x1358   :  { %v2341_v10 = vpop.f32.mrf.mxu1 }
0x1359   :  { %1215 = vrot.lane.b32.xlu0 %v1204_v8, %s2555_s18  ;;  %v1207_v15 = vadd.f32 %v1204_v8, %v1093_v14 }
0x135b   :  { %v2077_v17 = vmul.f32 -1.442695, %v1207_v15 }
0x135d   :  { %2477 = vpow2.f32 %v2077_v17 }
0x136a   :  { %v2478_v18 = vpop.eup %2477 }
0x136b   :  { %v1211_v1 = vadd.f32 1.0, %v2478_v18 }
0x136d   :  { %2479 = vrcp.f32 %v1211_v1 }
0x137a   :  { %v2480_v19 = vpop.eup %2479 }
0x137b   :  { %v1225_v63 = vsub.f32 1.0, %v2480_v19  ;;  %v1231_v30 = vmul.f32 0.0, %v2480_v19 }
0x13cb   :  { %v1216_v20 = vpop.permute.xlu0 %1215 }
0x13cc   :  { %v1218_v4 = vmul.f32 %v2480_v19, %v1216_v20 }
0x13ce   :  { %1220 = vrot.lane.b32.xlu1 %v1218_v4, %s2555_s18  ;;  %v1103_v4 = vadd.f32 %v2934_v0, %v1102_v13 }
0x1440   :  { %v1221_v21 = vpop.permute.xlu1 %1220 }
0x1441   :  { %v1223_v22 = vadd.f32 %v1221_v21, %v1093_v14  ;;  %v2980_v14 = vpop.f32.mrf.mxu0 }
0x1443   :  { %2481 = vtanh.f32 %v1223_v22  ;;  %v2982_v15 = vpop.f32.mrf.mxu0 }
0x1444   :  { %2483 = vpow2.f32 %v2066_v25 }
0x1450   :  { %v2482_v6 = vpop.eup %2481 }
0x1451   :  { %1227 = vrot.lane.b32.xlu0 %v2482_v6, %s2556_s3  ;;  %v2484_v26 = vpop.eup %2483 }
0x1452   :  { %v983_v27 = vadd.f32 1.0, %v2484_v26 }
0x1454   :  { %2485 = vrcp.f32 %v983_v27 }
0x1455   :  { %987 = vrot.lane.b32.xlu0 %v976_v23, %s2555_s18 }
0x1461   :  { %v2486_v33 = vpop.eup %2485 }
0x1462   :  { %v997_v38 = vsub.f32 1.0, %v2486_v33  ;;  %v1003_v39 = vmul.f32 %v2486_v33, %v2895_v57 }
0x14c3   :  { %v1228_v28 = vpop.permute.xlu0 %1227 }
0x14c4   :  { %v1230_v31 = vmul.f32 %v1228_v28, %v1225_v63 }
0x14c6   :  { %v1232_v32 = vadd.f32 %v1231_v30, %v1230_v31 }
0x14c7   :  { %v988_v35 = vpop.permute.xlu0 %987 }
0x14c8   :  { %v990_v36 = vmul.f32 %v2486_v33, %v988_v35  ;;  %1234 = vrot.lane.b32.xlu1 %v1232_v32, %s2556_s3 }
0x14ca   :  { %992 = vrot.lane.b32.xlu0 %v990_v36, %s2555_s18 }
0x153a   :  { %v1235_v11 = vpop.permute.xlu1 %1234 }
0x153b   :  { %2351 = vmatmul.mubr.msk.f32.vlgmr.msra.gmra.mxu1 %vm63_vm0, %v1235_v11 }
0x153c   :  { %v993_v16 = vpop.permute.xlu0 %992  ;;  %2365 = vmatpush3.msra.mxu1 %v2870_v5  ;;  %2372 = vmatprep.mubr.msk.f32.mxu1 %vm2554_vm1, %v2553_v3 }
0x153d   :  { %v995_v2 = vadd.f32 %v993_v16, %v190_v24  ;;  %2366 = vmatprep.subr.mxu1 %v2553_v3 }
0x153e   :  { %2367 = vmatpush3.msra.mxu1 %v2876_v50 }
0x153f   :  { %2487 = vtanh.f32 %v995_v2  ;;  %2368 = vmatprep.subr.mxu1 %v2553_v3  ;;  %v1108_v2 = vadd.f32 %v2324_v12, %v2934_v0 }
0x1540   :  { %2369 = vmatpush3.msra.mxu1 %v2883_v51 }
0x1541   :  { %2370 = vmatprep.subr.mxu1 %v2553_v3 }
0x1542   :  { %2371 = vmatpush3.msra.mxu1 %v2890_v52 }
0x1543   :  { %2386 = vmatprep.subr.mxu1 %v2553_v3 }
0x154c   :  { %v2488_v37 = vpop.eup %2487 }
0x154d   :  { %999 = vrot.lane.b32.xlu0 %v2488_v37, %s2556_s3 }
0x15bf   :  { %v1000_v34 = vpop.permute.xlu0 %999 }
0x15c0   :  { %v1002_v40 = vmul.f32 %v1000_v34, %v997_v38 }
0x15c2   :  { %v1004_v60 = vadd.f32 %v1003_v39, %v1002_v40 }
0x15c4   :  { %1022 = vrot.lane.b32.xlu0 %v1004_v60, %s2556_s3 }
0x15fb   :  { %v1304_v41 = vpop.f32.mrf.mxu1 }
0x15fc   :  { %v1305_v42 = vadd.f32 %v2925_v62, %v1304_v41 }
0x15fd   :  { %v2352_v29 = vpop.f32.mrf.mxu1 }
0x15fe   :  { %1316 = vrot.lane.b32.xlu1 %v1305_v42, %s2555_s18  ;;  %v1308_v45 = vadd.f32 %v1305_v42, %v1098_v44 }
0x1600   :  { %v2079_v46 = vmul.f32 -1.442695, %v1308_v45 }
0x1602   :  { %2489 = vpow2.f32 %v2079_v46 }
0x160f   :  { %v2490_v47 = vpop.eup %2489 }
0x1610   :  { %v1312_v48 = vadd.f32 1.0, %v2490_v47 }
0x1612   :  { %2491 = vrcp.f32 %v1312_v48 }
0x161f   :  { %v2492_v49 = vpop.eup %2491 }
0x1620   :  { %v1326_v58 = vsub.f32 1.0, %v2492_v49  ;;  %v1332_v61 = vmul.f32 %v2492_v49, %v1232_v32 }
0x1636   :  { %v1023_v43 = vpop.permute.xlu0 %1022 }
0x1637   :  { %2329 = vmatmul.mubr.msk.f32.gmra.mxu0 %vm63_vm0, %v1023_v43 }
0x1638   :  { %2361 = vmatprep.mubr.msk.f32.mxu0 %vm2554_vm1, %v2553_v3 }
0x1670   :  { %v1317_v53 = vpop.permute.xlu1 %1316 }
0x1671   :  { %v1319_v54 = vmul.f32 %v2492_v49, %v1317_v53 }
0x1673   :  { %1321 = vrot.lane.b32.xlu1 %v1319_v54, %s2555_s18 }
0x16e5   :  { %v1322_v55 = vpop.permute.xlu1 %1321 }
0x16e6   :  { %v1324_v56 = vadd.f32 %v1322_v55, %v1098_v44 }
0x16e8   :  { %2493 = vtanh.f32 %v1324_v56  ;;  %v1113_v56 = vadd.f32 %v2934_v0, %v2982_v15 }
0x16f5   :  { %v2494_v57 = vpop.eup %2493 }
0x16f6   :  { %1328 = vrot.lane.b32.xlu1 %v2494_v57, %s2556_s3 }
0x16f7   :  { %v2984_v17 = vpop.f32.mrf.mxu0 }
0x16f9   :  { %v2986_v18 = vpop.f32.mrf.mxu0 }
0x1768   :  { %v1329_v59 = vpop.permute.xlu1 %1328 }
0x1769   :  { %v1331_v7 = vmul.f32 %v1329_v59, %v1326_v58 }
0x176b   :  { %v1333_v8 = vadd.f32 %v1332_v61, %v1331_v7 }
0x176d   :  { %1335 = vrot.lane.b32.xlu1 %v1333_v8, %s2556_s3 }
0x17df   :  { %v1336_v10 = vpop.permute.xlu1 %1335 }
0x17e0   :  { %2362 = vmatmul.mubr.msk.f32.vlgmr.msra.gmra.mxu0 %vm63_vm0, %v1336_v10 }
0x17e1   :  { %2376 = vmatpush3.msra.mxu0 %v2870_v5  ;;  %2383 = vmatprep.mubr.msk.f32.mxu0 %vm2554_vm1, %v2553_v3 }
0x17e2   :  { %2377 = vmatprep.subr.mxu0 %v2553_v3 }
0x17e3   :  { %2378 = vmatpush3.msra.mxu0 %v2876_v50 }
0x17e4   :  { %2379 = vmatprep.subr.mxu0 %v2553_v3 }
0x17e5   :  { %2380 = vmatpush3.msra.mxu0 %v2883_v51 }
0x17e6   :  { %2381 = vmatprep.subr.mxu0 %v2553_v3 }
0x17e7   :  { %2382 = vmatpush3.msra.mxu0 %v2890_v52 }
0x17e8   :  { %2397 = vmatprep.subr.mxu0 %v2553_v3 }
0x18a0   :  { %v1405_v1 = vpop.f32.mrf.mxu0 }
0x18a1   :  { %v1406_v19 = vadd.f32 %v2925_v62, %v1405_v1 }
0x18a2   :  { %v2363_v20 = vpop.f32.mrf.mxu0 }
0x18a3   :  { %1417 = vrot.lane.b32.xlu0 %v1406_v19, %s2555_s18  ;;  %v1409_v21 = vadd.f32 %v1406_v19, %v1103_v4 }
0x18a5   :  { %v2081_v22 = vmul.f32 -1.442695, %v1409_v21 }
0x18a7   :  { %2495 = vpow2.f32 %v2081_v22 }
0x18b4   :  { %v2496_v6 = vpop.eup %2495 }
0x18b5   :  { %v1413_v23 = vadd.f32 1.0, %v2496_v6 }
0x18b7   :  { %2497 = vrcp.f32 %v1413_v23 }
0x18c4   :  { %v2498_v24 = vpop.eup %2497 }
0x18c5   :  { %v1427_v28 = vsub.f32 1.0, %v2498_v24  ;;  %v1433_v31 = vmul.f32 %v2498_v24, %v1333_v8 }
0x1915   :  { %v1418_v9 = vpop.permute.xlu0 %1417 }
0x1916   :  { %v1420_v25 = vmul.f32 %v2498_v24, %v1418_v9 }
0x1918   :  { %1422 = vrot.lane.b32.xlu1 %v1420_v25, %s2555_s18 }
0x198a   :  { %v1423_v26 = vpop.permute.xlu1 %1422 }
0x198b   :  { %v1425_v27 = vadd.f32 %v1423_v26, %v1103_v4 }
0x198d   :  { %2499 = vtanh.f32 %v1425_v27 }
0x199a   :  { %v2500_v63 = vpop.eup %2499 }
0x199b   :  { %1429 = vrot.lane.b32.xlu0 %v2500_v63, %s2556_s3 }
0x1a0d   :  { %v1430_v30 = vpop.permute.xlu0 %1429 }
0x1a0e   :  { %v1432_v32 = vmul.f32 %v1430_v30, %v1427_v28 }
0x1a10   :  { %v1434_v33 = vadd.f32 %v1433_v31, %v1432_v32 }
0x1a12   :  { %1436 = vrot.lane.b32.xlu1 %v1434_v33, %s2556_s3 }
0x1a84   :  { %v1437_v35 = vpop.permute.xlu1 %1436 }
0x1a85   :  { %2373 = vmatmul.mubr.msk.f32.vlgmr.msra.gmra.mxu1 %vm63_vm0, %v1437_v35 }
0x1a86   :  { %2387 = vmatpush3.msra.mxu1 %v2870_v5  ;;  %2394 = vmatprep.mubr.msk.f32.mxu1 %vm2554_vm1, %v2553_v3 }
0x1a87   :  { %2388 = vmatprep.subr.mxu1 %v2553_v3 }
0x1a88   :  { %2389 = vmatpush3.msra.mxu1 %v2876_v50 }
0x1a89   :  { %2390 = vmatprep.subr.mxu1 %v2553_v3 }
0x1a8a   :  { %2391 = vmatpush3.msra.mxu1 %v2883_v51 }
0x1a8b   :  { %2392 = vmatprep.subr.mxu1 %v2553_v3 }
0x1a8c   :  { %2393 = vmatpush3.msra.mxu1 %v2890_v52 }
0x1a8d   :  { %2408 = vmatprep.subr.mxu1 %v2553_v3 }
0x1b45   :  { %v1506_v36 = vpop.f32.mrf.mxu1 }
0x1b46   :  { %v1507_v11 = vadd.f32 %v2925_v62, %v1506_v36 }
0x1b47   :  { %v2374_v16 = vpop.f32.mrf.mxu1 }
0x1b48   :  { %1518 = vrot.lane.b32.xlu0 %v1507_v11, %s2555_s18  ;;  %v1510_v37 = vadd.f32 %v1507_v11, %v1108_v2 }
0x1b4a   :  { %v2083_v38 = vmul.f32 -1.442695, %v1510_v37  ;;  %v1123_v37 = vadd.f32 %v2934_v0, %v2986_v18 }
0x1b4c   :  { %2501 = vpow2.f32 %v2083_v38 }
0x1b59   :  { %v2502_v34 = vpop.eup %2501 }
0x1b5a   :  { %v1514_v39 = vadd.f32 1.0, %v2502_v34 }
0x1b5c   :  { %2503 = vrcp.f32 %v1514_v39 }
0x1b69   :  { %v2504_v40 = vpop.eup %2503 }
0x1b6a   :  { %v1528_v44 = vsub.f32 1.0, %v2504_v40  ;;  %v1534_v46 = vmul.f32 %v2504_v40, %v1434_v33 }
0x1bba   :  { %v1519_v60 = vpop.permute.xlu0 %1518 }
0x1bbb   :  { %v1521_v41 = vmul.f32 %v2504_v40, %v1519_v60 }
0x1bbd   :  { %1523 = vrot.lane.b32.xlu1 %v1521_v41, %s2555_s18 }
0x1c2f   :  { %v1524_v42 = vpop.permute.xlu1 %1523 }
0x1c30   :  { %v1526_v29 = vadd.f32 %v1524_v42, %v1108_v2 }
0x1c32   :  { %2505 = vtanh.f32 %v1526_v29 }
0x1c3f   :  { %v2506_v43 = vpop.eup %2505 }
0x1c40   :  { %1530 = vrot.lane.b32.xlu0 %v2506_v43, %s2556_s3 }
0x1cb2   :  { %v1531_v45 = vpop.permute.xlu0 %1530 }
0x1cb3   :  { %v1533_v47 = vmul.f32 %v1531_v45, %v1528_v44 }
0x1cb5   :  { %v1535_v48 = vadd.f32 %v1534_v46, %v1533_v47 }
0x1cb7   :  { %1537 = vrot.lane.b32.xlu1 %v1535_v48, %s2556_s3 }
0x1d29   :  { %v1538_v49 = vpop.permute.xlu1 %1537 }
0x1d2a   :  { %2384 = vmatmul.mubr.msk.f32.vlgmr.msra.gmra.mxu0 %vm63_vm0, %v1538_v49 }
0x1d2b   :  { %2398 = vmatpush3.msra.mxu0 %v2870_v5  ;;  %2405 = vmatprep.mubr.msk.f32.mxu0 %vm2554_vm1, %v2553_v3 }
0x1d2c   :  { %2399 = vmatprep.subr.mxu0 %v2553_v3 }
0x1d2d   :  { %2400 = vmatpush3.msra.mxu0 %v2876_v50 }
0x1d2e   :  { %2401 = vmatprep.subr.mxu0 %v2553_v3 }
0x1d2f   :  { %2402 = vmatpush3.msra.mxu0 %v2883_v51 }
0x1d30   :  { %2403 = vmatprep.subr.mxu0 %v2553_v3 }
0x1d31   :  { %2404 = vmatpush3.msra.mxu0 %v2890_v52 }
0x1d32   :  { %2419 = vmatprep.subr.mxu0 %v2553_v3 }
0x1dea   :  { %v1607_v53 = vpop.f32.mrf.mxu0 }
0x1deb   :  { %v1608_v54 = vadd.f32 %v2925_v62, %v1607_v53 }
0x1dec   :  { %v2385_v55 = vpop.f32.mrf.mxu0 }
0x1ded   :  { %1619 = vrot.lane.b32.xlu0 %v1608_v54, %s2555_s18  ;;  %v1611_v57 = vadd.f32 %v1608_v54, %v1113_v56 }
0x1def   :  { %v2085_v58 = vmul.f32 -1.442695, %v1611_v57 }
0x1df1   :  { %2507 = vpow2.f32 %v2085_v58 }
0x1dfe   :  { %v2508_v59 = vpop.eup %2507 }
0x1dff   :  { %v1615_v61 = vadd.f32 1.0, %v2508_v59 }
0x1e01   :  { %2509 = vrcp.f32 %v1615_v61 }
0x1e0e   :  { %v2510_v7 = vpop.eup %2509 }
0x1e0f   :  { %v1629_v19 = vsub.f32 1.0, %v2510_v7  ;;  %v1635_v15 = vmul.f32 %v2510_v7, %v1535_v48 }
0x1e5f   :  { %v1620_v8 = vpop.permute.xlu0 %1619 }
0x1e60   :  { %v1622_v10 = vmul.f32 %v2510_v7, %v1620_v8 }
0x1e62   :  { %1624 = vrot.lane.b32.xlu1 %v1622_v10, %s2555_s18 }
0x1ed4   :  { %v1625_v12 = vpop.permute.xlu1 %1624 }
0x1ed5   :  { %v1627_v13 = vadd.f32 %v1625_v12, %v1113_v56  ;;  %v1128_v56 = vadd.f32 %v2984_v17, %v2934_v0  ;;  %v1941_v17 = vld [vmem:[%s3095_s9 + $0x8] sm:$0xff] }
0x1ed7   :  { %2511 = vtanh.f32 %v1627_v13 }
0x1ee4   :  { %v2512_v1 = vpop.eup %2511 }
0x1ee5   :  { %1631 = vrot.lane.b32.xlu0 %v2512_v1, %s2556_s3  ;;  %v1940_v1 = vld [vmem:[%s3095_s9] sm:$0xff] }
0x1f57   :  { %v1632_v20 = vpop.permute.xlu0 %1631 }
0x1f58   :  { %v1634_v4 = vmul.f32 %v1632_v20, %v1629_v19 }
0x1f5a   :  { %v1636_v21 = vadd.f32 %v1635_v15, %v1634_v4 }
0x1f5c   :  { %1638 = vrot.lane.b32.xlu1 %v1636_v21, %s2556_s3 }
0x1fce   :  { %v1639_v22 = vpop.permute.xlu1 %1638 }
0x1fcf   :  { %2395 = vmatmul.mubr.msk.f32.vlgmr.msra.gmra.mxu1 %vm63_vm0, %v1639_v22 }
0x1fd0   :  { %2409 = vmatpush3.msra.mxu1 %v2870_v5  ;;  %2416 = vmatprep.mubr.msk.f32.mxu1 %vm2554_vm1, %v2553_v3  ;;  %v1118_v5 = vadd.f32 %v2980_v14, %v2934_v0  ;;  %v1942_v0 = vld [vmem:[%s3095_s9 + $0x10] sm:$0xff] }
0x1fd1   :  { %2410 = vmatprep.subr.mxu1 %v2553_v3 }
0x1fd2   :  { %2411 = vmatpush3.msra.mxu1 %v2876_v50 }
0x1fd3   :  { %2412 = vmatprep.subr.mxu1 %v2553_v3 }
0x1fd4   :  { %2413 = vmatpush3.msra.mxu1 %v2883_v51 }
0x1fd5   :  { %2414 = vmatprep.subr.mxu1 %v2553_v3 }
0x1fd6   :  { %2415 = vmatpush3.msra.mxu1 %v2890_v52 }
0x208f   :  { %v1708_v6 = vpop.f32.mrf.mxu1 }
0x2090   :  { %v1709_v23 = vadd.f32 %v2925_v62, %v1708_v6 }
0x2091   :  { %v2396_v24 = vpop.f32.mrf.mxu1 }
0x2092   :  { %1720 = vrot.lane.b32.xlu0 %v1709_v23, %s2555_s18  ;;  %v1712_v9 = vadd.f32 %v1709_v23, %v1118_v5  ;;  %v2092_v23 = vld [vmem:[%s3096_s10] ss:$0 sm:$0xff] }
0x2094   :  { %v2087_v25 = vmul.f32 -1.442695, %v1712_v9 }
0x2096   :  { %2513 = vpow2.f32 %v2087_v25 }
0x20a3   :  { %v2514_v50 = vpop.eup %2513 }
0x20a4   :  { %v1716_v26 = vadd.f32 1.0, %v2514_v50 }
0x20a6   :  { %2515 = vrcp.f32 %v1716_v26 }
0x20b3   :  { %v2516_v51 = vpop.eup %2515 }
0x20b4   :  { %v1730_v31 = vsub.f32 1.0, %v2516_v51  ;;  %v1736_v14 = vmul.f32 %v2516_v51, %v1636_v21 }
0x2104   :  { %v1721_v27 = vpop.permute.xlu0 %1720 }
0x2105   :  { %v1723_v63 = vmul.f32 %v2516_v51, %v1721_v27 }
0x2107   :  { %1725 = vrot.lane.b32.xlu1 %v1723_v63, %s2555_s18 }
0x2179   :  { %v1726_v52 = vpop.permute.xlu1 %1725 }
0x217a   :  { %v1728_v28 = vadd.f32 %v1726_v52, %v1118_v5 }
0x217c   :  { %2517 = vtanh.f32 %v1728_v28 }
0x2189   :  { %v2518_v30 = vpop.eup %2517 }
0x218a   :  { %1732 = vrot.lane.b32.xlu0 %v2518_v30, %s2556_s3 }
0x21fc   :  { %v1733_v32 = vpop.permute.xlu0 %1732 }
0x21fd   :  { %v1735_v33 = vmul.f32 %v1733_v32, %v1730_v31 }
0x21ff   :  { %v1737_v35 = vadd.f32 %v1736_v14, %v1735_v33 }
0x2201   :  { %1739 = vrot.lane.b32.xlu1 %v1737_v35, %s2556_s3 }
0x2273   :  { %v1740_v36 = vpop.permute.xlu1 %1739 }
0x2274   :  { %2406 = vmatmul.mubr.msk.f32.vlgmr.msra.gmra.mxu0 %vm63_vm0, %v1740_v36 }
0x2275   :  { %2427 = vmatprep.mubr.msk.f32.mxu0 %vm2554_vm1, %v2553_v3 }
0x2334   :  { %v1809_v11 = vpop.f32.mrf.mxu0 }
0x2335   :  { %v1810_v16 = vadd.f32 %v2925_v62, %v1809_v11 }
0x2336   :  { %v2407_v2 = vpop.f32.mrf.mxu0 }
0x2337   :  { %1821 = vrot.lane.b32.xlu0 %v1810_v16, %s2555_s18  ;;  %v1813_v38 = vadd.f32 %v1810_v16, %v1123_v37 }
0x2339   :  { %v2089_v34 = vmul.f32 -1.442695, %v1813_v38 }
0x233b   :  { %2519 = vpow2.f32 %v2089_v34 }
0x2348   :  { %v2520_v39 = vpop.eup %2519 }
0x2349   :  { %v1817_v40 = vadd.f32 1.0, %v2520_v39 }
0x234b   :  { %2521 = vrcp.f32 %v1817_v40 }
0x2358   :  { %v2522_v60 = vpop.eup %2521 }
0x2359   :  { %v1831_v45 = vsub.f32 1.0, %v2522_v60  ;;  %v1837_v18 = vmul.f32 %v2522_v60, %v1737_v35 }
0x23a9   :  { %v1822_v41 = vpop.permute.xlu0 %1821 }
0x23aa   :  { %v1824_v42 = vmul.f32 %v2522_v60, %v1822_v41 }
0x23ac   :  { %1826 = vrot.lane.b32.xlu1 %v1824_v42, %s2555_s18 }
0x241e   :  { %v1827_v29 = vpop.permute.xlu1 %1826 }
0x241f   :  { %v1829_v43 = vadd.f32 %v1827_v29, %v1123_v37 }
0x2421   :  { %2523 = vtanh.f32 %v1829_v43 }
0x242e   :  { %v2524_v44 = vpop.eup %2523 }
0x242f   :  { %1833 = vrot.lane.b32.xlu0 %v2524_v44, %s2556_s3 }
0x24a1   :  { %v1834_v46 = vpop.permute.xlu0 %1833 }
0x24a2   :  { %v1836_v47 = vmul.f32 %v1834_v46, %v1831_v45 }
0x24a4   :  { %v1838_v48 = vadd.f32 %v1837_v18, %v1836_v47 }
0x24a6   :  { %1840 = vrot.lane.b32.xlu1 %v1838_v48, %s2556_s3 }
0x2518   :  { %v1841_v49 = vpop.permute.xlu1 %1840 }
0x2519   :  { %2417 = vmatmul.mubr.msk.f32.vlgmr.msra.gmra.mxu1 %vm63_vm0, %v1841_v49 }
0x25d9   :  { %v1910_v53 = vpop.f32.mrf.mxu1 }
0x25da   :  { %v1911_v54 = vadd.f32 %v2925_v62, %v1910_v53  ;;  %v1943_v62 = vld [vmem:[%s3095_s9 + $0x18] sm:$0xff]  ;;  %s2557_s9 = smov [#allocation2]  }
0x25db   :  { %v2418_v55 = vpop.f32.mrf.mxu1  ;;  %2420 = vmatpush3.msra.mxu0 %v1943_v62  ;;  %s2034_s15 = sshll.u32 %s2557_s9, 4  ;;  %s2035_s15 = int_to_ptr.vmem [resolvable:$true] %s2034_s15 }
0x25dc   :  { %1922 = vrot.lane.b32.xlu0 %v1911_v54, %s2555_s18  ;;  %v1914_v57 = vadd.f32 %v1911_v54, %v1128_v56  ;;  %2421 = vmatprep.subr.mxu0 %v2553_v3  ;;  %s2531_s1 = scalar_lea.vmem %s2035_s15, 128  ;;  %p2536_p1 = scmp.lt.s32.totalorder %s2035_s15, %s2035_s15 }
0x25dd   :  { %2422 = vmatpush3.msra.mxu0 %v1942_v0  ;;  %p2532_p0 = scmp.ne.s32.totalorder %s2035_s15, %s2531_s1  ;;  %p2537_p2 = scmp.lt.s32.totalorder %s2531_s1, %s2531_s1 }
0x25de   :  { %v2091_v58 = vmul.f32 -1.442695, %v1914_v57  ;;  %2423 = vmatprep.subr.mxu0 %v2553_v3 }
0x25df   :  { %2424 = vmatpush3.msra.mxu0 %v1941_v17  ;;  %p2538_p3 = por %p2537_p2, %p2536_p1 }
0x25e0   :  { %2525 = vpow2.f32 %v2091_v58  ;;  %2425 = vmatprep.subr.mxu0 %v2553_v3 }
0x25e1   :  { %2426 = vmatpush3.msra.mxu0 %v1940_v1  ;;  %p2539_p4 = pnand %p2538_p3, %p2532_p0 }
0x25ed   :  { %v2526_v59 = vpop.eup %2525 }
0x25ee   :  { %v1918_v61 = vadd.f32 1.0, %v2526_v59 }
0x25f0   :  { %2527 = vrcp.f32 %v1918_v61 }
0x25fd   :  { %v2528_v7 = vpop.eup %2527 }
0x25fe   :  { %v1932_v20 = vsub.f32 1.0, %v2528_v7  ;;  %v1938_v4 = vmul.f32 %v2528_v7, %v1838_v48 }
0x264e   :  { %v1923_v8 = vpop.permute.xlu0 %1922 }
0x264f   :  { %v1925_v10 = vmul.f32 %v2528_v7, %v1923_v8 }
0x2651   :  { %1927 = vrot.lane.b32.xlu1 %v1925_v10, %s2555_s18 }
0x26c3   :  { %v1928_v12 = vpop.permute.xlu1 %1927 }
0x26c4   :  { %v1930_v13 = vadd.f32 %v1928_v12, %v1128_v56 }
0x26c6   :  { %2529 = vtanh.f32 %v1930_v13 }
0x26d3   :  { %v2530_v19 = vpop.eup %2529 }
0x26d4   :  { %1934 = vrot.lane.b32.xlu0 %v2530_v19, %s2556_s3 }
0x2746   :  { %v1935_v15 = vpop.permute.xlu0 %1934 }
0x2747   :  { %v1937_v21 = vmul.f32 %v1935_v15, %v1932_v20 }
0x2749   :  { %v1939_v22 = vadd.f32 %v1938_v4, %v1937_v21 }
0x274b   :  { %1952 = vrot.lane.b32.xlu1 %v1939_v22, %s2556_s3 }
0x27bd   :  { %v1953_v6 = vpop.permute.xlu1 %1952 }
0x27be   :  { %2428 = vmatmul.mubr.msk.f32.vlgmr.msra.gmra.mxu0 %vm63_vm0, %v1953_v6 }
0x287e   :  { %v2022_v3 = vpop.f32.mrf.mxu0 }
0x287f   :  { %v2023_v24 = vadd.f32 %v2092_v23, %v2022_v3 }
0x2880   :  { %v2429_v5 = vpop.f32.mrf.mxu0 }
0x2881   :  { %2027 = vst.msk [vmem:[#allocation2] sm:$0xff] %vm2026_vm2, %v2023_v24 }
0x2882   :  { %2542 = shalt.err (!%p2539_p4)
}
0x2883   :  { %2037 = dma.vmem_to_hbm [thread:$0]  %s2035_s15, 128, %s3097_s11, [#allocation3]  }
0x2884   :  { %2551 = dma.done.wait [#allocation3], 128  }
0x2885   :  { %2552 = vsyncadd [#allocation3], 4294967168 }
0x2886   :  { %2041 = vsyncpa [#allocation3], 1 }

</bundles_post_ra>
